<compile_context>
chip_gen: v7x
topology: tpu7x:2x2x1
jax: 0.10.0
libtpu: 0.0.40
codegen_flags: <defaults>
</compile_context>

<pallas_src>
from functools import partial

import numpy as np
import jax
import jax.numpy as jnp
from jax import lax
from jax.experimental import pallas as pl
from jax.experimental.pallas import tpu as pltpu


# ---------------------------------------------------------------------------
# Pallas kernel: one (batch, window-row) tile per grid step.
#   x_ref     : (1, M, C)          query tokens of this window row (f32)
#   xd_ref    : (1, NKrow, C)      max-pooled K/V tokens of this window row (f32)
#   wq_ref    : (C, C)             Wq.T * scale (bf16)
#   bq_ref    : (1, C)             bq * scale (f32)
#   wkv_ref   : (C, 2C)            [Wk.T | Wv.T] fused (bf16)
#   bkv_ref   : (1, 2C)            [bk | bv] (f32)
#   wl_ref    : (C, OUT)           output projection Wl.T (bf16)
#   bl_ref    : (1, OUT)           output bias (f32)
#   bm_ref    : (1, M, NH*NKrow)   rel-pos bias + window/shift mask, heads
#                                  stacked along the key axis (bf16)
#   hmask_ref : (NH*NKrow, C)      0/1 head-block mask (bf16)
#   o_ref     : (1, M*OUT/128,128) or (1, M, OUT)   output (f32)
# ---------------------------------------------------------------------------
def _wmsa_kernel(x_ref, xd_ref, wq_ref, bq_ref, wkv_ref, bkv_ref,
                 wl_ref, bl_ref, bm_ref, hmask_ref, o_ref, *, n_heads):
    C = wq_ref.shape[0]
    x = x_ref[0].astype(jnp.bfloat16)          # [M, C]
    xd = xd_ref[0].astype(jnp.bfloat16)        # [NKrow, C]

    # Fused projections on the MXU (q-scale folded into Wq/bq on the host).
    q = (jnp.dot(x, wq_ref[...], preferred_element_type=jnp.float32)
         + bq_ref[...]).astype(jnp.bfloat16)                        # [M, C]
    kv = (jnp.dot(xd, wkv_ref[...], preferred_element_type=jnp.float32)
          + bkv_ref[...]).astype(jnp.bfloat16)                      # [NKrow, 2C]
    k = kv[:, :C]                                                   # [NKrow, C]
    v = kv[:, C:]                                                   # [NKrow, C]

    # Stack heads along the key axis: row h*NKrow+j keeps only head-h channels.
    hmask = hmask_ref[...]                                          # [NH*NKrow, C]
    kt = jnp.concatenate([k] * n_heads, axis=0) * hmask             # [NH*NKrow, C]
    vt = jnp.concatenate([v] * n_heads, axis=0) * hmask             # [NH*NKrow, C]

    # All-head logits in ONE lane-dense dot (contract the channel axis of both).
    logits = lax.dot_general(q, kt, (((1,), (1,)), ((), ())),
                             preferred_element_type=jnp.float32)    # [M, NH*NKrow]
    logits = logits + bm_ref[0].astype(jnp.float32)

    # Row-global max shift: per-head softmax is invariant to any per-row
    # constant; the -1e30 masked columns still underflow to exactly 0 after
    # exp.  (Every query row keeps at least its own window's keys unmasked in
    # this module, so the per-head denominator is never zero.)
    logits = logits - jnp.max(logits, axis=-1, keepdims=True)
    p = jnp.exp(logits).astype(jnp.bfloat16)                        # [M, NH*NKrow]

    # num: concatenated per-head attention outputs; den: per-head softmax
    # denominators, broadcast to each head's channel block via the same mask.
    num = jnp.dot(p, vt, preferred_element_type=jnp.float32)        # [M, C]
    den = jnp.dot(p, hmask, preferred_element_type=jnp.float32)     # [M, C]
    attn = (num * pl.reciprocal(den, approx=True)).astype(jnp.bfloat16)

    y = jnp.dot(attn, wl_ref[...], preferred_element_type=jnp.float32) + bl_ref[...]
    # Lane-dense store: o_ref's block is (1, M*OUT//128, 128) when possible.
    o_ref[0] = y.reshape(o_ref.shape[1:]).astype(o_ref.dtype)


# ---------------------------------------------------------------------------
# Host-side helpers (deterministic w.r.t. static config / params)
# ---------------------------------------------------------------------------
def relative_embedding(table, window_size, down_r):
    """table: [n_heads, 2w-1, 2w-1] -> [n_heads, w*w, w*w/d/d].
    Matches PyTorch WMSA.relative_embedding (incl. its rel[:, :ndp] shortcut)."""
    ws = window_size
    ndp = (ws * ws) // (down_r * down_r)
    coords = np.array([[i, j] for i in range(ws) for j in range(ws)])
    rel = coords[:, None, :] - coords[None, :, :] + ws - 1
    rel = rel[:, :ndp, :]
    return table[:, rel[:, :, 0], rel[:, :, 1]]


def shift_mask_bool(w1, w2, p, d, shift):
    """Boolean SW-MSA mask, shape [w1*w2, p*p, (p/d)^2] (mirrors generate_mask)."""
    m = np.zeros((w1, w2, p, p, p // d, p // d), dtype=bool)
    s = p - shift
    m[-1, :, :s, :, s // d:, :] = True
    m[-1, :, s:, :, :s // d, :] = True
    m[:, -1, :, :s, :, s // d:] = True
    m[:, -1, :, s:, :, :s // d] = True
    return m.reshape(w1 * w2, p * p, (p // d) * (p // d))


def build_bias_mask_rows(rel_bias, shifted, w1, w2, ws, d, shift, width):
    """Additive bias+mask in the head-stacked, window-row-tiled layout
       [w1, ws*width, NH*NKrow]:
         - rel-pos bias on (query row, same-window key) entries,
         - SW shift mask added there (when shifted),
         - -1e30 for cross-window keys."""
    NH, NP, NDP = rel_bias.shape
    wsd = ws // d
    Wd = width // d
    M = ws * width
    NKrow = w2 * NDP                      # == wsd * Wd
    NEG = np.float32(-1e30)
    smask = shift_mask_bool(w1, w2, ws, d, shift) if shifted else None
    bm = np.full((w1, M, NH * NKrow), NEG, dtype=np.float32)
    p1 = np.arange(ws)
    p2 = np.arange(ws)
    dp1 = np.arange(wsd)
    dp2 = np.arange(wsd)
    for wi in range(w1):
        for wj in range(w2):
            blk = rel_bias.astype(np.float32).copy()          # [NH, NP, NDP]
            if smask is not None:
                blk = np.where(smask[wi * w2 + wj][None], NEG, blk)
            # query raster index inside the window row: p1*width + wj*ws + p2
            rows = (p1[:, None] * width + wj * ws + p2[None, :]).reshape(NP)
            # pooled-raster key index inside the window row: dp1*Wd + wj*wsd + dp2
            cols = (dp1[:, None] * Wd + wj * wsd + dp2[None, :]).reshape(NDP)
            for h in range(NH):
                bm[wi, rows[:, None], h * NKrow + cols[None, :]] = blk[h]
    return bm


# ---------------------------------------------------------------------------
# Builder: prepares constants once (like module init) and returns a jitted fwd.
# ---------------------------------------------------------------------------
def make_wmsa_forward(params, *, window_size, down_r, attn_type, head_dim,
                      height, width, lane_dense_out=True):
    ws, d = window_size, down_r
    C = params["wq"].shape[1]
    OUT = params["wl"].shape[0]
    n_heads = C // head_dim
    assert height % ws == 0 and width % ws == 0 and ws % d == 0 and C % head_dim == 0
    w1, w2 = height // ws, width // ws
    wsd = ws // d
    HW = height * width
    M = ws * width                       # queries per window row
    NKrow = wsd * (width // d)           # pooled keys per window row (= w2 * NDP)
    NHK = n_heads * NKrow
    shift = ws // 2
    shifted = attn_type != "W"
    scale = float(head_dim) ** (-0.5)
    assert M % 8 == 0 and NKrow % 8 == 0, "window-row tile must be sublane aligned"
    lane_dense = lane_dense_out and (M * OUT) % 128 == 0

    # ---- host-precomputed constants (would live in module init) ----
    rel_bias = np.asarray(relative_embedding(np.asarray(params["rel_table"]), ws, d))
    bm = build_bias_mask_rows(rel_bias, shifted, w1, w2, ws, d, shift, width)
    bm = jnp.asarray(bm, dtype=jnp.bfloat16)            # [w1, M, NH*NKrow]
    hmask_np = np.zeros((NHK, C), np.float32)
    for h in range(n_heads):
        hmask_np[h * NKrow:(h + 1) * NKrow, h * head_dim:(h + 1) * head_dim] = 1.0
    hmask = jnp.asarray(hmask_np, dtype=jnp.bfloat16)

    # PyTorch Linear: y = x @ W.T + b.  Fold q scale; fuse K|V.
    wq_t = (jnp.asarray(params["wq"]).T * scale).astype(jnp.bfloat16)            # [C, C]
    bq = (jnp.asarray(params["bq"]) * scale).reshape(1, C).astype(jnp.float32)
    wkv_t = jnp.concatenate([jnp.asarray(params["wk"]).T,
                             jnp.asarray(params["wv"]).T], axis=1).astype(jnp.bfloat16)
    bkv = jnp.concatenate([jnp.asarray(params["bk"]),
                           jnp.asarray(params["bv"])]).reshape(1, 2 * C).astype(jnp.float32)
    wl_t = jnp.asarray(params["wl"]).T.astype(jnp.bfloat16)                       # [C, OUT]
    bl = jnp.asarray(params["bl"]).reshape(1, OUT).astype(jnp.float32)

    kern = partial(_wmsa_kernel, n_heads=n_heads)

    def fwd(x):
        B = x.shape[0]
        if shifted:
            x = jnp.roll(x, shift=(-shift, -shift), axis=(1, 2))
        x_tok = x.reshape(B, HW, C)                          # contiguous: free
        # 2x2 max-pooled K/V tokens, window-row-major pooled-raster order.
        xd_tok = x.reshape(B, height // d, d, width // d, d, C).max(axis=(2, 4))
        xd_tok = xd_tok.reshape(B, (height // d) * (width // d), C)

        if lane_dense:
            rows_step = (M * OUT) // 128
            out_sds = jax.ShapeDtypeStruct((B, w1 * rows_step, 128), jnp.float32)
            out_spec = pl.BlockSpec((1, rows_step, 128), lambda b, r: (b, r, 0))
        else:
            out_sds = jax.ShapeDtypeStruct((B, HW, OUT), jnp.float32)
            out_spec = pl.BlockSpec((1, M, OUT), lambda b, r: (b, r, 0))

        out = pl.pallas_call(
            kern,
            out_shape=out_sds,
            grid_spec=pltpu.PrefetchScalarGridSpec(
                num_scalar_prefetch=0,
                grid=(B, w1),
                in_specs=[
                    pl.BlockSpec((1, M, C), lambda b, r: (b, r, 0)),       # queries
                    pl.BlockSpec((1, NKrow, C), lambda b, r: (b, r, 0)),   # pooled kv
                    pl.BlockSpec((C, C), lambda b, r: (0, 0)),             # Wq.T*scale
                    pl.BlockSpec((1, C), lambda b, r: (0, 0)),             # bq*scale
                    pl.BlockSpec((C, 2 * C), lambda b, r: (0, 0)),         # [Wk.T|Wv.T]
                    pl.BlockSpec((1, 2 * C), lambda b, r: (0, 0)),         # [bk|bv]
                    pl.BlockSpec((C, OUT), lambda b, r: (0, 0)),           # Wl.T
                    pl.BlockSpec((1, OUT), lambda b, r: (0, 0)),           # bl
                    pl.BlockSpec((1, M, NHK), lambda b, r: (r, 0, 0)),     # bias+mask
                    pl.BlockSpec((NHK, C), lambda b, r: (0, 0)),           # head mask
                ],
                out_specs=out_spec,
            ),
            compiler_params=pltpu.CompilerParams(
                dimension_semantics=("parallel", "parallel")),
        )(x_tok, xd_tok, wq_t, bq, wkv_t, bkv, wl_t, bl, bm, hmask)

        out = out.reshape(B, height, width, OUT)             # contiguous: free
        if shifted:
            out = jnp.roll(out, shift=(shift, shift), axis=(1, 2))
        return out

    return jax.jit(fwd)


# ---------------------------------------------------------------------------
# Pure-JAX f32 reference (mirrors the PyTorch WMSA.forward) for checking.
# ---------------------------------------------------------------------------
def _window_and_pool(x, window_size, down_r):
    B, H, W, C = x.shape
    ws, d = window_size, down_r
    w1, w2 = H // ws, W // ws
    xw = x.reshape(B, w1, ws, w2, ws, C).transpose(0, 1, 3, 2, 4, 5)
    x_win = xw.reshape(B, w1 * w2, ws * ws, C)
    xd = xw.reshape(B, w1, w2, ws // d, d, ws // d, d, C).max(axis=(4, 6))
    xd_win = xd.reshape(B, w1 * w2, (ws // d) * (ws // d), C)
    return x_win, xd_win, w1, w2


def wmsa_reference(x, params, *, window_size, down_r, attn_type, head_dim):
    B, H, W, C = x.shape
    ws, d = window_size, down_r
    n_heads = C // head_dim
    scale = float(head_dim) ** (-0.5)
    shift = ws // 2

    if attn_type != "W":
        x = jnp.roll(x, shift=(-shift, -shift), axis=(1, 2))
    x_win, xd_win, w1, w2 = _window_and_pool(x, ws, d)
    nW = w1 * w2
    NP = ws * ws

    q = x_win @ params["wq"].T + params["bq"]
    k = xd_win @ params["wk"].T + params["bk"]
    v = xd_win @ params["wv"].T + params["bv"]

    def split_heads(t):
        return t.reshape(B, nW, -1, n_heads, head_dim).transpose(3, 0, 1, 2, 4)

    qh, kh, vh = split_heads(q), split_heads(k), split_heads(v)
    attn = jnp.einsum("hbwpd,hbwqd->hbwpq", qh * scale, kh)
    attn = attn + jnp.asarray(
        relative_embedding(np.asarray(params["rel_table"]), ws, d))[:, None, None]
    if attn_type != "W":
        smask = shift_mask_bool(w1, w2, ws, d, shift)
        attn = attn + jnp.where(jnp.asarray(smask), jnp.float32(-1e30),
                                jnp.float32(0.0))[None, None]
    probs = jax.nn.softmax(attn, axis=-1)
    o = jnp.einsum("hbwpq,hbwqd->hbwpd", probs, vh)
    o = o.transpose(1, 2, 3, 0, 4).reshape(B, nW, NP, C)
    o = o @ params["wl"].T + params["bl"]
    out_dim = params["wl"].shape[0]
    o = o.reshape(B, w1, w2, ws, ws, out_dim).transpose(0, 1, 3, 2, 4, 5)
    o = o.reshape(B, H, W, out_dim)
    if attn_type != "W":
        o = jnp.roll(o, shift=(shift, shift), axis=(1, 2))
    return o


# ---------------------------------------------------------------------------
if __name__ == "__main__":
    key = jax.random.PRNGKey(0)
    B, H, W = 2, 16, 16
    input_dim = output_dim = 32
    head_dim = 8
    window_size = 8
    down_r = 2
    n_heads = input_dim // head_dim

    ks = jax.random.split(key, 10)
    params = {
        "wq": jax.random.normal(ks[0], (input_dim, input_dim), jnp.float32) * 0.05,
        "bq": jax.random.normal(ks[1], (input_dim,), jnp.float32) * 0.05,
        "wk": jax.random.normal(ks[2], (input_dim, input_dim), jnp.float32) * 0.05,
        "bk": jax.random.normal(ks[3], (input_dim,), jnp.float32) * 0.05,
        "wv": jax.random.normal(ks[4], (input_dim, input_dim), jnp.float32) * 0.05,
        "bv": jax.random.normal(ks[5], (input_dim,), jnp.float32) * 0.05,
        "wl": jax.random.normal(ks[6], (output_dim, input_dim), jnp.float32) * 0.05,
        "bl": jax.random.normal(ks[7], (output_dim,), jnp.float32) * 0.05,
        # trunc_normal_(std=0.02), stored as [n_heads, 2w-1, 2w-1]
        "rel_table": jax.random.truncated_normal(
            ks[8], -2.0, 2.0, (n_heads, 2 * window_size - 1, 2 * window_size - 1),
            jnp.float32) * 0.02,
    }
    x = jax.random.normal(ks[9], (B, H, W, input_dim), jnp.float32)

    def run(attn_type, lane_dense):
        fwd = make_wmsa_forward(params, window_size=window_size, down_r=down_r,
                                attn_type=attn_type, head_dim=head_dim,
                                height=H, width=W, lane_dense_out=lane_dense)
        return jax.block_until_ready(fwd(x))

    for attn_type in ("W", "SW"):
        try:
            out = run(attn_type, True)
        except Exception:
            # Fallback for Mosaic builds without support for the in-kernel
            # [M, OUT] -> [M*OUT/128, 128] relayout used by the lane-dense store.
            out = run(attn_type, False)
        ref = wmsa_reference(x, params, window_size=window_size, down_r=down_r,
                             attn_type=attn_type, head_dim=head_dim)
        # Pallas path runs the MXU dots in bf16 (f32 accumulation); reference is f32.
        np.testing.assert_allclose(np.asarray(out), np.asarray(ref),
                                   rtol=5e-2, atol=5e-3)

    print("KERNEL_OK")
</pallas_src>

<mosaic_0001>
module attributes {stable_mosaic.version = 11 : i64} {
  func.func @_wmsa_kernel(%arg0: i32, %arg1: i32, %arg2: memref<1x128x32xf32, #tpu.memory_space<vmem>>, %arg3: memref<1x32x32xf32, #tpu.memory_space<vmem>>, %arg4: memref<32x32xbf16, #tpu.memory_space<vmem>>, %arg5: memref<1x32xf32, #tpu.memory_space<vmem>>, %arg6: memref<32x64xbf16, #tpu.memory_space<vmem>>, %arg7: memref<1x64xf32, #tpu.memory_space<vmem>>, %arg8: memref<32x32xbf16, #tpu.memory_space<vmem>>, %arg9: memref<1x32xf32, #tpu.memory_space<vmem>>, %arg10: memref<1x128x128xbf16, #tpu.memory_space<vmem>>, %arg11: memref<128x32xbf16, #tpu.memory_space<vmem>>, %arg12: memref<1x32x128xf32, #tpu.memory_space<vmem>>) attributes {dimension_semantics = [#tpu.dimension_semantics<parallel>, #tpu.dimension_semantics<parallel>], iteration_bounds = array<i64: 2, 2>, scalar_prefetch = 0 : i64, scratch_operands = 0 : i64, tpu.core_type = #tpu.core_type<tc>, window_params = [{transform_indices = @transform_0, window_bounds = array<i64: 1, 128, 32>}, {transform_indices = @transform_1, window_bounds = array<i64: 1, 32, 32>}, {pipeline_mode = #tpu.pipeline_mode<synchronous>, transform_indices = @transform_2, window_bounds = array<i64: 32, 32>}, {pipeline_mode = #tpu.pipeline_mode<synchronous>, transform_indices = @transform_3, window_bounds = array<i64: 1, 32>}, {pipeline_mode = #tpu.pipeline_mode<synchronous>, transform_indices = @transform_4, window_bounds = array<i64: 32, 64>}, {pipeline_mode = #tpu.pipeline_mode<synchronous>, transform_indices = @transform_5, window_bounds = array<i64: 1, 64>}, {pipeline_mode = #tpu.pipeline_mode<synchronous>, transform_indices = @transform_6, window_bounds = array<i64: 32, 32>}, {pipeline_mode = #tpu.pipeline_mode<synchronous>, transform_indices = @transform_7, window_bounds = array<i64: 1, 32>}, {transform_indices = @transform_8, window_bounds = array<i64: 1, 128, 128>}, {pipeline_mode = #tpu.pipeline_mode<synchronous>, transform_indices = @transform_9, window_bounds = array<i64: 128, 32>}, {transform_indices = @transform_10, window_bounds = array<i64: 1, 32, 128>}]} {
    %c0 = arith.constant 0 : index
    %c0_0 = arith.constant 0 : index
    %c0_1 = arith.constant 0 : index
    %0 = vector.load %arg2[%c0, %c0_0, %c0_1] : memref<1x128x32xf32, #tpu.memory_space<vmem>>, vector<1x128x32xf32>
    %1 = vector.shape_cast %0 : vector<1x128x32xf32> to vector<128x32xf32>
    %2 = arith.truncf %1 : vector<128x32xf32> to vector<128x32xbf16>
    %c0_2 = arith.constant 0 : index
    %c0_3 = arith.constant 0 : index
    %c0_4 = arith.constant 0 : index
    %3 = vector.load %arg3[%c0_2, %c0_3, %c0_4] : memref<1x32x32xf32, #tpu.memory_space<vmem>>, vector<1x32x32xf32>
    %4 = vector.shape_cast %3 : vector<1x32x32xf32> to vector<32x32xf32>
    %5 = arith.truncf %4 : vector<32x32xf32> to vector<32x32xbf16>
    %c0_5 = arith.constant 0 : index
    %c0_6 = arith.constant 0 : index
    %6 = vector.load %arg4[%c0_5, %c0_6] : memref<32x32xbf16, #tpu.memory_space<vmem>>, vector<32x32xbf16>
    %cst = arith.constant dense<0.000000e+00> : vector<128x32xf32>
    %7 = tpu.matmul %2, %6, %cst {dimension_numbers = #tpu.dot_dimension_numbers<[1], [0], [0], [1], [0, 0, 1, 1], [], []>} : vector<128x32xbf16>, vector<32x32xbf16>, vector<128x32xf32> -> vector<128x32xf32>
    %c0_7 = arith.constant 0 : index
    %c0_8 = arith.constant 0 : index
    %8 = vector.load %arg5[%c0_7, %c0_8] : memref<1x32xf32, #tpu.memory_space<vmem>>, vector<1x32xf32>
    %9 = vector.broadcast %8 : vector<1x32xf32> to vector<128x32xf32>
    %10 = arith.addf %7, %9 : vector<128x32xf32>
    %11 = arith.truncf %10 : vector<128x32xf32> to vector<128x32xbf16>
    %c0_9 = arith.constant 0 : index
    %c0_10 = arith.constant 0 : index
    %12 = vector.load %arg6[%c0_9, %c0_10] : memref<32x64xbf16, #tpu.memory_space<vmem>>, vector<32x64xbf16>
    %cst_11 = arith.constant dense<0.000000e+00> : vector<32x64xf32>
    %13 = tpu.matmul %5, %12, %cst_11 {dimension_numbers = #tpu.dot_dimension_numbers<[1], [0], [0], [1], [0, 0, 1, 1], [], []>} : vector<32x32xbf16>, vector<32x64xbf16>, vector<32x64xf32> -> vector<32x64xf32>
    %c0_12 = arith.constant 0 : index
    %c0_13 = arith.constant 0 : index
    %14 = vector.load %arg7[%c0_12, %c0_13] : memref<1x64xf32, #tpu.memory_space<vmem>>, vector<1x64xf32>
    %15 = vector.broadcast %14 : vector<1x64xf32> to vector<32x64xf32>
    %16 = arith.addf %13, %15 : vector<32x64xf32>
    %17 = arith.truncf %16 : vector<32x64xf32> to vector<32x64xbf16>
    %18 = vector.extract_strided_slice %17 {offsets = [0, 0], sizes = [32, 32], strides = [1, 1]} : vector<32x64xbf16> to vector<32x32xbf16>
    %19 = vector.extract_strided_slice %17 {offsets = [0, 32], sizes = [32, 32], strides = [1, 1]} : vector<32x64xbf16> to vector<32x32xbf16>
    %c0_14 = arith.constant 0 : index
    %c0_15 = arith.constant 0 : index
    %20 = vector.load %arg11[%c0_14, %c0_15] : memref<128x32xbf16, #tpu.memory_space<vmem>>, vector<128x32xbf16>
    %21 = tpu.concatenate %18, %18, %18, %18 in 0 : vector<32x32xbf16>, vector<32x32xbf16>, vector<32x32xbf16>, vector<32x32xbf16> -> vector<128x32xbf16>
    %22 = arith.mulf %21, %20 : vector<128x32xbf16>
    %23 = tpu.concatenate %19, %19, %19, %19 in 0 : vector<32x32xbf16>, vector<32x32xbf16>, vector<32x32xbf16>, vector<32x32xbf16> -> vector<128x32xbf16>
    %24 = arith.mulf %23, %20 : vector<128x32xbf16>
    %cst_16 = arith.constant dense<0.000000e+00> : vector<128x128xf32>
    %25 = tpu.matmul %11, %22, %cst_16 {dimension_numbers = #tpu.dot_dimension_numbers<[1], [1], [0], [0], [0, 0, 1, 0], [], []>} : vector<128x32xbf16>, vector<128x32xbf16>, vector<128x128xf32> -> vector<128x128xf32>
    %c0_17 = arith.constant 0 : index
    %c0_18 = arith.constant 0 : index
    %c0_19 = arith.constant 0 : index
    %26 = vector.load %arg10[%c0_17, %c0_18, %c0_19] : memref<1x128x128xbf16, #tpu.memory_space<vmem>>, vector<1x128x128xbf16>
    %27 = vector.shape_cast %26 : vector<1x128x128xbf16> to vector<128x128xbf16>
    %28 = arith.extf %27 : vector<128x128xbf16> to vector<128x128xf32>
    %29 = arith.addf %25, %28 : vector<128x128xf32>
    %cst_20 = arith.constant dense<0xFF800000> : vector<128xf32>
    %30 = vector.multi_reduction <maximumf>, %29, %cst_20 [1] : vector<128x128xf32> to vector<128xf32>
    %31 = vector.shape_cast %30 : vector<128xf32> to vector<128x1xf32>
    %32 = vector.broadcast %31 : vector<128x1xf32> to vector<128x128xf32>
    %33 = arith.subf %29, %32 : vector<128x128xf32>
    %34 = math.exp %33 : vector<128x128xf32>
    %35 = arith.truncf %34 : vector<128x128xf32> to vector<128x128xbf16>
    %cst_21 = arith.constant dense<0.000000e+00> : vector<128x32xf32>
    %36 = tpu.matmul %35, %24, %cst_21 {dimension_numbers = #tpu.dot_dimension_numbers<[1], [0], [0], [1], [0, 0, 1, 1], [], []>} : vector<128x128xbf16>, vector<128x32xbf16>, vector<128x32xf32> -> vector<128x32xf32>
    %cst_22 = arith.constant dense<0.000000e+00> : vector<128x32xf32>
    %37 = tpu.matmul %35, %20, %cst_22 {dimension_numbers = #tpu.dot_dimension_numbers<[1], [0], [0], [1], [0, 0, 1, 1], [], []>} : vector<128x128xbf16>, vector<128x32xbf16>, vector<128x32xf32> -> vector<128x32xf32>
    %38 = tpu.reciprocal %37 {approx = true} : vector<128x32xf32> -> vector<128x32xf32>
    %39 = arith.mulf %36, %38 : vector<128x32xf32>
    %40 = arith.truncf %39 : vector<128x32xf32> to vector<128x32xbf16>
    %c0_23 = arith.constant 0 : index
    %c0_24 = arith.constant 0 : index
    %41 = vector.load %arg8[%c0_23, %c0_24] : memref<32x32xbf16, #tpu.memory_space<vmem>>, vector<32x32xbf16>
    %cst_25 = arith.constant dense<0.000000e+00> : vector<128x32xf32>
    %42 = tpu.matmul %40, %41, %cst_25 {dimension_numbers = #tpu.dot_dimension_numbers<[1], [0], [0], [1], [0, 0, 1, 1], [], []>} : vector<128x32xbf16>, vector<32x32xbf16>, vector<128x32xf32> -> vector<128x32xf32>
    %c0_26 = arith.constant 0 : index
    %c0_27 = arith.constant 0 : index
    %43 = vector.load %arg9[%c0_26, %c0_27] : memref<1x32xf32, #tpu.memory_space<vmem>>, vector<1x32xf32>
    %44 = vector.broadcast %43 : vector<1x32xf32> to vector<128x32xf32>
    %45 = arith.addf %42, %44 : vector<128x32xf32>
    %46 = vector.shape_cast %45 : vector<128x32xf32> to vector<32x128xf32>
    %c0_28 = arith.constant 0 : index
    %c0_29 = arith.constant 0 : index
    %c0_30 = arith.constant 0 : index
    %47 = vector.load %arg12[%c0_28, %c0_29, %c0_30] : memref<1x32x128xf32, #tpu.memory_space<vmem>>, vector<1x32x128xf32>
    %48 = vector.shape_cast %47 : vector<1x32x128xf32> to vector<32x128xf32>
    %49 = vector.shape_cast %46 : vector<32x128xf32> to vector<1x32x128xf32>
    tpu.vector_store %arg12[%c0_28, %c0_29, %c0_30], %49 {strides = array<i32>} : memref<1x32x128xf32, #tpu.memory_space<vmem>>, vector<1x32x128xf32>,
    return
  }
  func.func @transform_0(%arg0: i32, %arg1: i32) -> (i32, i32, i32) {
    %c0_i32 = arith.constant 0 : i32
    %c0_i32_0 = arith.constant 0 : i32
    return %arg0, %arg1, %c0_i32 : i32, i32, i32
  }
  func.func @transform_1(%arg0: i32, %arg1: i32) -> (i32, i32, i32) {
    %c0_i32 = arith.constant 0 : i32
    %c0_i32_0 = arith.constant 0 : i32
    return %arg0, %arg1, %c0_i32 : i32, i32, i32
  }
  func.func @transform_2(%arg0: i32, %arg1: i32) -> (i32, i32) {
    %c0_i32 = arith.constant 0 : i32
    %c0_i32_0 = arith.constant 0 : i32
    %c0_i32_1 = arith.constant 0 : i32
    return %c0_i32, %c0_i32_0 : i32, i32
  }
  func.func @transform_3(%arg0: i32, %arg1: i32) -> (i32, i32) {
    %c0_i32 = arith.constant 0 : i32
    %c0_i32_0 = arith.constant 0 : i32
    %c0_i32_1 = arith.constant 0 : i32
    return %c0_i32, %c0_i32_0 : i32, i32
  }
  func.func @transform_4(%arg0: i32, %arg1: i32) -> (i32, i32) {
    %c0_i32 = arith.constant 0 : i32
    %c0_i32_0 = arith.constant 0 : i32
    %c0_i32_1 = arith.constant 0 : i32
    return %c0_i32, %c0_i32_0 : i32, i32
  }
  func.func @transform_5(%arg0: i32, %arg1: i32) -> (i32, i32) {
    %c0_i32 = arith.constant 0 : i32
    %c0_i32_0 = arith.constant 0 : i32
    %c0_i32_1 = arith.constant 0 : i32
    return %c0_i32, %c0_i32_0 : i32, i32
  }
  func.func @transform_6(%arg0: i32, %arg1: i32) -> (i32, i32) {
    %c0_i32 = arith.constant 0 : i32
    %c0_i32_0 = arith.constant 0 : i32
    %c0_i32_1 = arith.constant 0 : i32
    return %c0_i32, %c0_i32_0 : i32, i32
  }
  func.func @transform_7(%arg0: i32, %arg1: i32) -> (i32, i32) {
    %c0_i32 = arith.constant 0 : i32
    %c0_i32_0 = arith.constant 0 : i32
    %c0_i32_1 = arith.constant 0 : i32
    return %c0_i32, %c0_i32_0 : i32, i32
  }
  func.func @transform_8(%arg0: i32, %arg1: i32) -> (i32, i32, i32) {
    %c0_i32 = arith.constant 0 : i32
    %c0_i32_0 = arith.constant 0 : i32
    %c0_i32_1 = arith.constant 0 : i32
    return %arg1, %c0_i32, %c0_i32_0 : i32, i32, i32
  }
  func.func @transform_9(%arg0: i32, %arg1: i32) -> (i32, i32) {
    %c0_i32 = arith.constant 0 : i32
    %c0_i32_0 = arith.constant 0 : i32
    %c0_i32_1 = arith.constant 0 : i32
    return %c0_i32, %c0_i32_0 : i32, i32
  }
  func.func @transform_10(%arg0: i32, %arg1: i32) -> (i32, i32, i32) {
    %c0_i32 = arith.constant 0 : i32
    %c0_i32_0 = arith.constant 0 : i32
    return %arg0, %arg1, %c0_i32 : i32, i32, i32
  }
}

module attributes {stable_mosaic.version = 11 : i64} {
  func.func @_wmsa_kernel(%arg0: i32, %arg1: i32, %arg2: memref<1x128x32xf32, #tpu.memory_space<vmem>>, %arg3: memref<1x32x32xf32, #tpu.memory_space<vmem>>, %arg4: memref<32x32xbf16, #tpu.memory_space<vmem>>, %arg5: memref<1x32xf32, #tpu.memory_space<vmem>>, %arg6: memref<32x64xbf16, #tpu.memory_space<vmem>>, %arg7: memref<1x64xf32, #tpu.memory_space<vmem>>, %arg8: memref<32x32xbf16, #tpu.memory_space<vmem>>, %arg9: memref<1x32xf32, #tpu.memory_space<vmem>>, %arg10: memref<1x128x128xbf16, #tpu.memory_space<vmem>>, %arg11: memref<128x32xbf16, #tpu.memory_space<vmem>>, %arg12: memref<1x128x32xf32, #tpu.memory_space<vmem>>) attributes {dimension_semantics = [#tpu.dimension_semantics<parallel>, #tpu.dimension_semantics<parallel>], iteration_bounds = array<i64: 2, 2>, scalar_prefetch = 0 : i64, scratch_operands = 0 : i64, tpu.core_type = #tpu.core_type<tc>, window_params = [{transform_indices = @transform_0, window_bounds = array<i64: 1, 128, 32>}, {transform_indices = @transform_1, window_bounds = array<i64: 1, 32, 32>}, {pipeline_mode = #tpu.pipeline_mode<synchronous>, transform_indices = @transform_2, window_bounds = array<i64: 32, 32>}, {pipeline_mode = #tpu.pipeline_mode<synchronous>, transform_indices = @transform_3, window_bounds = array<i64: 1, 32>}, {pipeline_mode = #tpu.pipeline_mode<synchronous>, transform_indices = @transform_4, window_bounds = array<i64: 32, 64>}, {pipeline_mode = #tpu.pipeline_mode<synchronous>, transform_indices = @transform_5, window_bounds = array<i64: 1, 64>}, {pipeline_mode = #tpu.pipeline_mode<synchronous>, transform_indices = @transform_6, window_bounds = array<i64: 32, 32>}, {pipeline_mode = #tpu.pipeline_mode<synchronous>, transform_indices = @transform_7, window_bounds = array<i64: 1, 32>}, {transform_indices = @transform_8, window_bounds = array<i64: 1, 128, 128>}, {pipeline_mode = #tpu.pipeline_mode<synchronous>, transform_indices = @transform_9, window_bounds = array<i64: 128, 32>}, {transform_indices = @transform_10, window_bounds = array<i64: 1, 128, 32>}]} {
    %c0 = arith.constant 0 : index
    %c0_0 = arith.constant 0 : index
    %c0_1 = arith.constant 0 : index
    %0 = vector.load %arg2[%c0, %c0_0, %c0_1] : memref<1x128x32xf32, #tpu.memory_space<vmem>>, vector<1x128x32xf32>
    %1 = vector.shape_cast %0 : vector<1x128x32xf32> to vector<128x32xf32>
    %2 = arith.truncf %1 : vector<128x32xf32> to vector<128x32xbf16>
    %c0_2 = arith.constant 0 : index
    %c0_3 = arith.constant 0 : index
    %c0_4 = arith.constant 0 : index
    %3 = vector.load %arg3[%c0_2, %c0_3, %c0_4] : memref<1x32x32xf32, #tpu.memory_space<vmem>>, vector<1x32x32xf32>
    %4 = vector.shape_cast %3 : vector<1x32x32xf32> to vector<32x32xf32>
    %5 = arith.truncf %4 : vector<32x32xf32> to vector<32x32xbf16>
    %c0_5 = arith.constant 0 : index
    %c0_6 = arith.constant 0 : index
    %6 = vector.load %arg4[%c0_5, %c0_6] : memref<32x32xbf16, #tpu.memory_space<vmem>>, vector<32x32xbf16>
    %cst = arith.constant dense<0.000000e+00> : vector<128x32xf32>
    %7 = tpu.matmul %2, %6, %cst {dimension_numbers = #tpu.dot_dimension_numbers<[1], [0], [0], [1], [0, 0, 1, 1], [], []>} : vector<128x32xbf16>, vector<32x32xbf16>, vector<128x32xf32> -> vector<128x32xf32>
    %c0_7 = arith.constant 0 : index
    %c0_8 = arith.constant 0 : index
    %8 = vector.load %arg5[%c0_7, %c0_8] : memref<1x32xf32, #tpu.memory_space<vmem>>, vector<1x32xf32>
    %9 = vector.broadcast %8 : vector<1x32xf32> to vector<128x32xf32>
    %10 = arith.addf %7, %9 : vector<128x32xf32>
    %11 = arith.truncf %10 : vector<128x32xf32> to vector<128x32xbf16>
    %c0_9 = arith.constant 0 : index
    %c0_10 = arith.constant 0 : index
    %12 = vector.load %arg6[%c0_9, %c0_10] : memref<32x64xbf16, #tpu.memory_space<vmem>>, vector<32x64xbf16>
    %cst_11 = arith.constant dense<0.000000e+00> : vector<32x64xf32>
    %13 = tpu.matmul %5, %12, %cst_11 {dimension_numbers = #tpu.dot_dimension_numbers<[1], [0], [0], [1], [0, 0, 1, 1], [], []>} : vector<32x32xbf16>, vector<32x64xbf16>, vector<32x64xf32> -> vector<32x64xf32>
    %c0_12 = arith.constant 0 : index
    %c0_13 = arith.constant 0 : index
    %14 = vector.load %arg7[%c0_12, %c0_13] : memref<1x64xf32, #tpu.memory_space<vmem>>, vector<1x64xf32>
    %15 = vector.broadcast %14 : vector<1x64xf32> to vector<32x64xf32>
    %16 = arith.addf %13, %15 : vector<32x64xf32>
    %17 = arith.truncf %16 : vector<32x64xf32> to vector<32x64xbf16>
    %18 = vector.extract_strided_slice %17 {offsets = [0, 0], sizes = [32, 32], strides = [1, 1]} : vector<32x64xbf16> to vector<32x32xbf16>
    %19 = vector.extract_strided_slice %17 {offsets = [0, 32], sizes = [32, 32], strides = [1, 1]} : vector<32x64xbf16> to vector<32x32xbf16>
    %c0_14 = arith.constant 0 : index
    %c0_15 = arith.constant 0 : index
    %20 = vector.load %arg11[%c0_14, %c0_15] : memref<128x32xbf16, #tpu.memory_space<vmem>>, vector<128x32xbf16>
    %21 = tpu.concatenate %18, %18, %18, %18 in 0 : vector<32x32xbf16>, vector<32x32xbf16>, vector<32x32xbf16>, vector<32x32xbf16> -> vector<128x32xbf16>
    %22 = arith.mulf %21, %20 : vector<128x32xbf16>
    %23 = tpu.concatenate %19, %19, %19, %19 in 0 : vector<32x32xbf16>, vector<32x32xbf16>, vector<32x32xbf16>, vector<32x32xbf16> -> vector<128x32xbf16>
    %24 = arith.mulf %23, %20 : vector<128x32xbf16>
    %cst_16 = arith.constant dense<0.000000e+00> : vector<128x128xf32>
    %25 = tpu.matmul %11, %22, %cst_16 {dimension_numbers = #tpu.dot_dimension_numbers<[1], [1], [0], [0], [0, 0, 1, 0], [], []>} : vector<128x32xbf16>, vector<128x32xbf16>, vector<128x128xf32> -> vector<128x128xf32>
    %c0_17 = arith.constant 0 : index
    %c0_18 = arith.constant 0 : index
    %c0_19 = arith.constant 0 : index
    %26 = vector.load %arg10[%c0_17, %c0_18, %c0_19] : memref<1x128x128xbf16, #tpu.memory_space<vmem>>, vector<1x128x128xbf16>
    %27 = vector.shape_cast %26 : vector<1x128x128xbf16> to vector<128x128xbf16>
    %28 = arith.extf %27 : vector<128x128xbf16> to vector<128x128xf32>
    %29 = arith.addf %25, %28 : vector<128x128xf32>
    %cst_20 = arith.constant dense<0xFF800000> : vector<128xf32>
    %30 = vector.multi_reduction <maximumf>, %29, %cst_20 [1] : vector<128x128xf32> to vector<128xf32>
    %31 = vector.shape_cast %30 : vector<128xf32> to vector<128x1xf32>
    %32 = vector.broadcast %31 : vector<128x1xf32> to vector<128x128xf32>
    %33 = arith.subf %29, %32 : vector<128x128xf32>
    %34 = math.exp %33 : vector<128x128xf32>
    %35 = arith.truncf %34 : vector<128x128xf32> to vector<128x128xbf16>
    %cst_21 = arith.constant dense<0.000000e+00> : vector<128x32xf32>
    %36 = tpu.matmul %35, %24, %cst_21 {dimension_numbers = #tpu.dot_dimension_numbers<[1], [0], [0], [1], [0, 0, 1, 1], [], []>} : vector<128x128xbf16>, vector<128x32xbf16>, vector<128x32xf32> -> vector<128x32xf32>
    %cst_22 = arith.constant dense<0.000000e+00> : vector<128x32xf32>
    %37 = tpu.matmul %35, %20, %cst_22 {dimension_numbers = #tpu.dot_dimension_numbers<[1], [0], [0], [1], [0, 0, 1, 1], [], []>} : vector<128x128xbf16>, vector<128x32xbf16>, vector<128x32xf32> -> vector<128x32xf32>
    %38 = tpu.reciprocal %37 {approx = true} : vector<128x32xf32> -> vector<128x32xf32>
    %39 = arith.mulf %36, %38 : vector<128x32xf32>
    %40 = arith.truncf %39 : vector<128x32xf32> to vector<128x32xbf16>
    %c0_23 = arith.constant 0 : index
    %c0_24 = arith.constant 0 : index
    %41 = vector.load %arg8[%c0_23, %c0_24] : memref<32x32xbf16, #tpu.memory_space<vmem>>, vector<32x32xbf16>
    %cst_25 = arith.constant dense<0.000000e+00> : vector<128x32xf32>
    %42 = tpu.matmul %40, %41, %cst_25 {dimension_numbers = #tpu.dot_dimension_numbers<[1], [0], [0], [1], [0, 0, 1, 1], [], []>} : vector<128x32xbf16>, vector<32x32xbf16>, vector<128x32xf32> -> vector<128x32xf32>
    %c0_26 = arith.constant 0 : index
    %c0_27 = arith.constant 0 : index
    %43 = vector.load %arg9[%c0_26, %c0_27] : memref<1x32xf32, #tpu.memory_space<vmem>>, vector<1x32xf32>
    %44 = vector.broadcast %43 : vector<1x32xf32> to vector<128x32xf32>
    %45 = arith.addf %42, %44 : vector<128x32xf32>
    %c0_28 = arith.constant 0 : index
    %c0_29 = arith.constant 0 : index
    %c0_30 = arith.constant 0 : index
    %46 = vector.load %arg12[%c0_28, %c0_29, %c0_30] : memref<1x128x32xf32, #tpu.memory_space<vmem>>, vector<1x128x32xf32>
    %47 = vector.shape_cast %46 : vector<1x128x32xf32> to vector<128x32xf32>
    %48 = vector.shape_cast %45 : vector<128x32xf32> to vector<1x128x32xf32>
    tpu.vector_store %arg12[%c0_28, %c0_29, %c0_30], %48 {strides = array<i32>} : memref<1x128x32xf32, #tpu.memory_space<vmem>>, vector<1x128x32xf32>,
    return
  }
  func.func @transform_0(%arg0: i32, %arg1: i32) -> (i32, i32, i32) {
    %c0_i32 = arith.constant 0 : i32
    %c0_i32_0 = arith.constant 0 : i32
    return %arg0, %arg1, %c0_i32 : i32, i32, i32
  }
  func.func @transform_1(%arg0: i32, %arg1: i32) -> (i32, i32, i32) {
    %c0_i32 = arith.constant 0 : i32
    %c0_i32_0 = arith.constant 0 : i32
    return %arg0, %arg1, %c0_i32 : i32, i32, i32
  }
  func.func @transform_2(%arg0: i32, %arg1: i32) -> (i32, i32) {
    %c0_i32 = arith.constant 0 : i32
    %c0_i32_0 = arith.constant 0 : i32
    %c0_i32_1 = arith.constant 0 : i32
    return %c0_i32, %c0_i32_0 : i32, i32
  }
  func.func @transform_3(%arg0: i32, %arg1: i32) -> (i32, i32) {
    %c0_i32 = arith.constant 0 : i32
    %c0_i32_0 = arith.constant 0 : i32
    %c0_i32_1 = arith.constant 0 : i32
    return %c0_i32, %c0_i32_0 : i32, i32
  }
  func.func @transform_4(%arg0: i32, %arg1: i32) -> (i32, i32) {
    %c0_i32 = arith.constant 0 : i32
    %c0_i32_0 = arith.constant 0 : i32
    %c0_i32_1 = arith.constant 0 : i32
    return %c0_i32, %c0_i32_0 : i32, i32
  }
  func.func @transform_5(%arg0: i32, %arg1: i32) -> (i32, i32) {
    %c0_i32 = arith.constant 0 : i32
    %c0_i32_0 = arith.constant 0 : i32
    %c0_i32_1 = arith.constant 0 : i32
    return %c0_i32, %c0_i32_0 : i32, i32
  }
  func.func @transform_6(%arg0: i32, %arg1: i32) -> (i32, i32) {
    %c0_i32 = arith.constant 0 : i32
    %c0_i32_0 = arith.constant 0 : i32
    %c0_i32_1 = arith.constant 0 : i32
    return %c0_i32, %c0_i32_0 : i32, i32
  }
  func.func @transform_7(%arg0: i32, %arg1: i32) -> (i32, i32) {
    %c0_i32 = arith.constant 0 : i32
    %c0_i32_0 = arith.constant 0 : i32
    %c0_i32_1 = arith.constant 0 : i32
    return %c0_i32, %c0_i32_0 : i32, i32
  }
  func.func @transform_8(%arg0: i32, %arg1: i32) -> (i32, i32, i32) {
    %c0_i32 = arith.constant 0 : i32
    %c0_i32_0 = arith.constant 0 : i32
    %c0_i32_1 = arith.constant 0 : i32
    return %arg1, %c0_i32, %c0_i32_0 : i32, i32, i32
  }
  func.func @transform_9(%arg0: i32, %arg1: i32) -> (i32, i32) {
    %c0_i32 = arith.constant 0 : i32
    %c0_i32_0 = arith.constant 0 : i32
    %c0_i32_1 = arith.constant 0 : i32
    return %c0_i32, %c0_i32_0 : i32, i32
  }
  func.func @transform_10(%arg0: i32, %arg1: i32) -> (i32, i32, i32) {
    %c0_i32 = arith.constant 0 : i32
    %c0_i32_0 = arith.constant 0 : i32
    return %arg0, %arg1, %c0_i32 : i32, i32, i32
  }
}

</mosaic_0001>

<bundles_post_ra>
// kernel: fwd.1
= control target key start
LH: loop header
LB: loop body
LE: loop exit
PB: predicated region body
PF: predicated region fallthrough
CT: control target
= control target key end

     0   :  { %s3251_s0 = inlined_call_operand.vmem [shape: f32[2,256,32], index: 0, kind: input, shape index: {}]   ;;  %s3252_s1 = inlined_call_operand.vmem [shape: f32[2,64,32], index: 1, kind: input, shape index: {}]   ;;  %s3253_s2 = inlined_call_operand.hbm [shape: bf16[32,32], index: 2, kind: input, shape index: {}]   ;;  %s3254_s3 = inlined_call_operand.hbm [shape: f32[1,32], index: 3, kind: input, shape index: {}]   ;;  %s3255_s4 = inlined_call_operand.hbm [shape: bf16[32,64], index: 4, kind: input, shape index: {}]   ;;  %s3256_s5 = inlined_call_operand.hbm [shape: f32[1,64], index: 5, kind: input, shape index: {}]   ;;  %s3257_s6 = inlined_call_operand.hbm [shape: bf16[32,32], index: 6, kind: input, shape index: {}]   ;;  %s3258_s7 = inlined_call_operand.vmem [shape: f32[1,32], index: 7, kind: input, shape index: {}]   ;;  %s3259_s8 = inlined_call_operand.vmem [shape: bf16[2,128,128], index: 8, kind: input, shape index: {}]   ;;  %s3260_s9 = inlined_call_operand.vmem [shape: bf16[128,32], index: 9, kind: input, shape index: {}]   ;;  %s3261_s10 = inlined_call_operand.hbm [shape: f32[2,256,32], index: 10, kind: output, shape index: {}]  }
   0x1   :  { %3275 = sst [smem:[#allocation25_spill]] %s3254_s3 }
   0x2   :  { %3276 = sst [smem:[#allocation26_spill]] %s3256_s5 }
   0x3   :  { %15 = vsyncpa [#allocation3], 0 }
   0x4   :  { %16 = vsyncpa [#allocation6], 0 }
   0x5   :  { %17 = vsyncpa [#allocation9], 0 }
   0x6   :  { %18 = vsyncpa [#allocation4], 0 }
   0x7   :  { %20 = vsyncpa [#allocation4 + $0x1], 0  ;;  %s2613_s13 = smov 0   ;;  %s2615_s14 = smov 0  }
   0x8   :  { %s2617_s15 = smov 0   ;;  %s2619_s16 = smov 0  }
   0x9   :  { %s2621_s17 = smov 0   ;;  %s2623_s18 = smov 0  }
   0xa   :  { %s2625_s19 = smov 0   ;;  %s2627_s20 = smov 0  }
   0xb LB: > { %3277 = sst [smem:[#allocation16_spill]] %s2516_s13  ;;  %s1751_s21 = sadd.s32 4294967295, %s2544_s20   ;;  %s2544_s20 = sphi %s2627_s20, %s26_s20   ;;  %s2540_s19 = sphi %s2625_s19, %s3306_s19   ;;  %s2536_s18 = sphi %s2623_s18, %s3305_s18   ;;  %s2532_s17 = sphi %s2621_s17, %s3304_s17   ;;  %s2528_s16 = sphi %s2619_s16, %s3303_s16   ;;  %s2524_s15 = sphi %s2617_s15, %s3302_s15   ;;  %s2520_s14 = sphi %s2615_s14, %s3308_s14   ;;  %s2516_s13 = sphi %s2613_s13, %s3307_s13  }
   0xc   : > { %3278 = sst [smem:[#allocation17_spill]] %s2524_s15  ;;  %s1752_s22 = sadd.s32 4294967294, %s2544_s20  }
   0xd   : > { %3279 = sst [smem:[#allocation18_spill]] %s2536_s18  ;;  %s35_s23 = sadd.s32 1, %s2536_s18 }
   0xe   : > { %3280 = sst [smem:[#allocation19_spill]] %s2540_s19  ;;  %s38_s24 = sadd.s32 1, %s2540_s19 }
   0xf   : > { %3281 = sst [smem:[#allocation20_spill]] %s2544_s20  ;;  %p36_p0 = scmp.ge.s32.totalorder %s35_s23, 2 }
  0x10   : > { %s276_s25 = sadd.s32 1, %s2524_s15  ;;  %p286_p1 = scmp.ne.s32.totalorder %s2524_s15, %s2520_s14 }
  0x11   : > { %p287_p2 = scmp.eq.s32.totalorder %s1751_s21, 3  ;;  %s3310_s23 = smov (%p36_p0, %s35_s23), 0 }
  0x12   : > { %3282 = sst [smem:[#allocation21_spill]] %s3310_s23  ;;  %s3312_s24 = smov (!%p36_p0, %s38_s24), %s2540_s19 }
  0x13   : > { %s272_s26 = ssub.s32 %s2536_s18, %s3310_s23  ;;  %p2665_p3 = por %p287_p2, %p286_p1 }
  0x14   : > { %p40_p4 = scmp.ge.s32.totalorder %s3312_s24, 2  ;;  %p292_p5 = scmp.ne.s32.totalorder %s2520_s14, %s2516_s13 }
  0x15   : > { %s3283_s27 = scalar_select %p2665_p3, 1, 0 }
  0x16   : > { %p293_p6 = scmp.eq.s32.totalorder %s1752_s22, 3  ;;  %p1753_p7 = scmp.ge.s32.totalorder %s2544_s20, 1 }
  0x17   : > { %s3314_s24 = smov (%p40_p4, %s3312_s24), 0  ;;  %p300_p9 = scmp.lt.s32.totalorder %s2544_s20, 5 }
  0x18   : > { %3284 = sst [smem:[#allocation22_spill]] %s3314_s24  ;;  %p2674_p8 = por %p293_p6, %p292_p5 }
  0x19   : > { %s271_s29 = ssub.s32 %s2540_s19, %s3314_s24  ;;  %p2681_p10 = pnand %p1753_p7, %p300_p9 }
  0x1a   : > { %s3285_s28 = scalar_select %p2674_p8, 1, 0 }
  0x1b   : > { %s273_s30 = sor.u32 %s272_s26, %s271_s29  ;;  %p2685_p12 = scmp.eq.s32.totalorder %s1751_s21, 0 }
  0x1c   : > { %3286 = sst [smem:[#allocation23_spill]] %s3285_s28  ;;  %p274_p11 = scmp.eq.s32.totalorder %s273_s30, 0 }
  0x1d   : > { %s3287_s11 = scalar_select %p2681_p10, 1, 0 }
  0x1e   : > { %s3288_s12 = scalar_select %p2685_p12, 1, 0 }
  0x1f   : > { %p2114_p13 = pneg %p2681_p10  ;;  %s2546_s26 = smov [#allocation5]  }
  0x20   : > { %s2692_s22 = scalar_select %p274_p11, %s2524_s15, %s276_s25  }
  0x21   : > { %p2696_p0 = pnand %p2685_p12, %p2114_p13  ;;  %s326_s29 = sshll.u32 %s2546_s26, 4  ;;  %s327_s29 = int_to_ptr.vmem [resolvable:$true] %s326_s29 }
  0x22   : > { %3289 = sst [smem:[#allocation24_spill]] %s2692_s22  ;;  %s2547_s24 = smov [#allocation8]  }
  0x23   : > { %s350_s30 = sshll.u32 %s2547_s24, 4  ;;  %s3291_s3 = sld [smem:[#allocation25_spill]]  ;;  %s351_s30 = int_to_ptr.vmem [resolvable:$true] %s350_s30 }
  0x24   : > { %p2708_p2 = pneg %p2696_p0 }
  0x29   : > { %s2298_s18 = scalar_lea.hbm %s3291_s3, 16 }
  0x2a   : > { %p2299_p1 = scmp.ne.s32.totalorder %s3291_s3, %s2298_s18  ;;  %p2305_p6 = scmp.lt.u32.totalorder %s2298_s18, %s3291_s3 }
  0x2c   : > { %p2301_p4 = pnand %p2708_p2, %p2299_p1 }
  0x2e   : > { %p2302_p5 = pneg %p2301_p4 }
  0x30   : > { %p2307_p7 = pnand %p2305_p6, %p2302_p5 }
  0x32   : > { %2310 = shalt.err (!%p2307_p7)
}
  0x33   : > { %s2311_s19 = scalar_lea.vmem %s327_s29, 16  ;;  %s2318_s13 = scalar_lea.vmem %s327_s29, 32 }
  0x34   : > { %p2312_p9 = scmp.ne.s32.totalorder %s327_s29, %s2311_s19  ;;  %p2319_p8 = scmp.lt.s32.totalorder %s327_s29, %s327_s29 }
  0x35   : > { %p2320_p3 = scmp.lt.s32.totalorder %s2318_s13, %s2311_s19 }
  0x36   : > { %p2314_p11 = pnand %p2312_p9, %p2708_p2 }
  0x37   : > { %p2321_p12 = por %p2320_p3, %p2319_p8 }
  0x38   : > { %p2315_p13 = pneg %p2314_p11 }
  0x3a   : > { %p2322_p10 = pnand %p2321_p12, %p2315_p13 }
  0x3c   : > { %2325 = shalt.err (!%p2322_p10)
}
  0x3d   : > { %2120 = dma.hbm_to_vmem [thread:$0]  (!%p2696_p0), %s3291_s3, 16, %s327_s29, [#allocation6]  }
  0x3e   : > { %s3293_s5 = sld [smem:[#allocation26_spill]] }
  0x44   : > { %s2326_s21 = scalar_lea.hbm %s3293_s5, 16 }
  0x45   : > { %p2327_p1 = scmp.ne.s32.totalorder %s3293_s5, %s2326_s21  ;;  %p2333_p10 = scmp.lt.u32.totalorder %s2326_s21, %s3293_s5 }
  0x47   : > { %p2329_p3 = pnand %p2327_p1, %p2708_p2 }
  0x49   : > { %p2330_p8 = pneg %p2329_p3 }
  0x4b   : > { %p2335_p12 = pnand %p2333_p10, %p2330_p8 }
  0x4d   : > { %2338 = shalt.err (!%p2335_p12)
}
  0x4e   : > { %s2339_s24 = scalar_lea.vmem %s351_s30, 16  ;;  %s2346_s29 = scalar_lea.vmem %s351_s30, 32 }
  0x4f   : > { %p2340_p4 = scmp.ne.s32.totalorder %s351_s30, %s2339_s24  ;;  %p2347_p7 = scmp.lt.s32.totalorder %s351_s30, %s351_s30 }
  0x50   : > { %p2348_p9 = scmp.lt.s32.totalorder %s2346_s29, %s2339_s24 }
  0x51   : > { %p2342_p5 = pnand %p2340_p4, %p2708_p2 }
  0x52   : > { %p2349_p11 = por %p2348_p9, %p2347_p7 }
  0x53   : > { %p2343_p6 = pneg %p2342_p5 }
  0x55   : > { %p2350_p13 = pnand %p2349_p11, %p2343_p6 }
  0x57   : > { %2353 = shalt.err (!%p2350_p13)
}
  0x58   : > { %2126 = dma.hbm_to_vmem [thread:$0]  (!%p2696_p0), %s3293_s5, 16, %s351_s30, [#allocation9]  }
  0x59   : > { %s2548_s18 = smov [#allocation2]   ;;  %s2354_s19 = scalar_lea.hbm %s3253_s2, 256 }
  0x5a   : > { %s312_s22 = sshll.u32 %s2548_s18, 4  ;;  %p2355_p1 = scmp.ne.s32.totalorder %s3253_s2, %s2354_s19  ;;  %s313_s22 = int_to_ptr.vmem [resolvable:$true] %s312_s22 }
  0x5b   : > { %p2361_p10 = scmp.lt.u32.totalorder %s2354_s19, %s3253_s2 }
  0x5c   : > { %p2357_p3 = pnand %p2355_p1, %p2708_p2 }
  0x5e   : > { %p2358_p8 = pneg %p2357_p3 }
  0x60   : > { %p2363_p12 = pnand %p2361_p10, %p2358_p8 }
  0x62   : > { %2366 = shalt.err (!%p2363_p12)
}
  0x63   : > { %s2367_s30 = scalar_lea.vmem %s313_s22, 256  ;;  %p2375_p7 = scmp.lt.s32.totalorder %s313_s22, %s313_s22 }
  0x64   : > { %p2368_p4 = scmp.ne.s32.totalorder %s313_s22, %s2367_s30  ;;  %p2376_p9 = scmp.lt.s32.totalorder %s2367_s30, %s2367_s30 }
  0x66   : > { %p2370_p5 = pnand %p2368_p4, %p2708_p2  ;;  %p2377_p11 = por %p2376_p9, %p2375_p7 }
  0x68   : > { %p2371_p6 = pneg %p2370_p5 }
  0x6a   : > { %p2378_p13 = pnand %p2377_p11, %p2371_p6 }
  0x6c   : > { %2381 = shalt.err (!%p2378_p13)
}
  0x6d   : > { %s2549_s3 = smov 64   ;;  %s2550_s15 = smov 4  }
  0x6e   : > { %2117 = dma.hbm_to_vmem [thread:$0]  (!%p2696_p0), %s3253_s2, 256, %s313_s22, [#allocation3], %s2549_s3, %s2549_s3, %s2550_s15  }
  0x6f   : > { %s2551_s21 = smov [#allocation7]   ;;  %s2552_s19 = smov [#allocation10]  }
  0x70   : > { %s336_s26 = sshll.u32 %s2551_s21, 4  ;;  %s360_s13 = sshll.u32 %s2552_s19, 4  ;;  %s337_s26 = int_to_ptr.vmem [resolvable:$true] %s336_s26  ;;  %s2763_s13 = int_to_ptr.vmem [resolvable:$true] %s360_s13 }
  0x71   : > { %s2382_s30 = scalar_lea.hbm %s3255_s4, 256 }
  0x72   : > { %p2383_p1 = scmp.ne.s32.totalorder %s3255_s4, %s2382_s30  ;;  %p2389_p10 = scmp.lt.u32.totalorder %s2382_s30, %s3255_s4 }
  0x74   : > { %p2385_p3 = pnand %p2383_p1, %p2708_p2 }
  0x76   : > { %p2386_p8 = pneg %p2385_p3 }
  0x78   : > { %p2391_p12 = pnand %p2389_p10, %p2386_p8 }
  0x7a   : > { %2394 = shalt.err (!%p2391_p12)
}
  0x7b   : > { %s2395_s18 = scalar_lea.vmem %s337_s26, 256  ;;  %p2403_p7 = scmp.lt.s32.totalorder %s337_s26, %s337_s26 }
  0x7c   : > { %p2396_p4 = scmp.ne.s32.totalorder %s337_s26, %s2395_s18  ;;  %p2404_p9 = scmp.lt.s32.totalorder %s2395_s18, %s2395_s18 }
  0x7e   : > { %p2398_p5 = pnand %p2396_p4, %p2708_p2  ;;  %p2405_p11 = por %p2404_p9, %p2403_p7 }
  0x80   : > { %p2399_p6 = pneg %p2398_p5 }
  0x82   : > { %p2406_p13 = pnand %p2405_p11, %p2399_p6 }
  0x84   : > { %2409 = shalt.err (!%p2406_p13)
}
  0x85   : > { %2123 = dma.hbm_to_vmem [thread:$0]  (!%p2696_p0), %s3255_s4, 256, %s337_s26, [#allocation6], %s2549_s3, %s2549_s3, %s2550_s15  }
  0x86   : > { %s2410_s24 = scalar_lea.hbm %s3257_s6, 256 }
  0x87   : > { %p2411_p1 = scmp.ne.s32.totalorder %s3257_s6, %s2410_s24  ;;  %p2417_p10 = scmp.lt.u32.totalorder %s2410_s24, %s3257_s6 }
  0x89   : > { %p2413_p3 = pnand %p2411_p1, %p2708_p2 }
  0x8b   : > { %p2414_p8 = pneg %p2413_p3 }
  0x8d   : > { %p2419_p12 = pnand %p2417_p10, %p2414_p8 }
  0x8f   : > { %2422 = shalt.err (!%p2419_p12)
}
  0x90   : > { %s2423_s26 = scalar_lea.vmem %s2763_s13, 256  ;;  %p2431_p7 = scmp.lt.s32.totalorder %s2763_s13, %s2763_s13 }
  0x91   : > { %p2424_p4 = scmp.ne.s32.totalorder %s2763_s13, %s2423_s26  ;;  %p2432_p9 = scmp.lt.s32.totalorder %s2423_s26, %s2423_s26 }
  0x93   : > { %p2426_p5 = pnand %p2424_p4, %p2708_p2  ;;  %p2433_p11 = por %p2432_p9, %p2431_p7 }
  0x95   : > { %p2427_p6 = pneg %p2426_p5 }
  0x97   : > { %p2434_p13 = pnand %p2433_p11, %p2427_p6 }
  0x99   : > { %2437 = shalt.err (!%p2434_p13)
}
  0x9a   : > { %2129 = dma.hbm_to_vmem [thread:$0]  (!%p2696_p0), %s3257_s6, 256, %s2763_s13, [#allocation9], %s2549_s3, %s2549_s3, %s2550_s15  }
  0x9b   : > { %p3294_p1 = scmp.ne.s32.totalorder %s3287_s11, 0 }
  0x9c   : > { %p3295_p2 = scmp.ne.s32.totalorder (!%p3294_p1), %s3288_s12, 0 }
  0x9d   : > { %416 = sbr.rel (%p3294_p1) target bundleno = 1410 (0x582), region = 60 }
  0xa4   : > { %2499 = dma.done.wait (%p3295_p2), [#allocation3], 256  }
  0xa5   : > { %2501 = vsyncadd (%p3295_p2), [#allocation3], 4294967040 }
  0xa6   : > { %2503 = dma.done.wait (%p3295_p2), [#allocation6], 272  }
  0xa7   : > { %2505 = vsyncadd (%p3295_p2), [#allocation6], 4294967024 }
  0xa8   : > { %2507 = dma.done.wait (%p3295_p2), [#allocation9], 272  }
  0xa9   : > { %2509 = vsyncadd (%p3295_p2), [#allocation9], 4294967024  ;;  %s2827_s23 = sshll.u32 %s2528_s16, 4  ;;  %p489_p0 = scmp.lt.s32.totalorder %s2532_s17, 1  ;;  %v2220_v0 = vld [vmem:[#allocation7] sm:$0xff]   ;;  %v2221_v1 = vld [vmem:[#allocation7 + $0x8] sm:$0xff]  }
  0xaa   : > { %p491_p3 = scmp.lt.s32.totalorder %s2827_s23, 31  ;;  %s1770_s11 = sshll.u32 %s2528_s16, 2  ;;  %1956 = vmatprep.subr.bf16.mxu1 %v2220_v0  ;;  %v2222_v2 = vld [vmem:[#allocation2] sm:$0xff]   ;;  %v2223_v3 = vld [vmem:[#allocation2 + $0x8] sm:$0xff]   ;;  %vm568_vm0 = vcmask 261120   ;;  %v2854_v19 = vld [vmem:[%s3260_s9 + $0x10] sm:$0xff]  }
  0xab   : > { %s490_s25 = scalar_select %p489_p0, %s2532_s17, 1  ;;  %1957 = vmatpush3.bf16.msra.mxu1 %v2220_v0  ;;  %1936 = vmatprep.subr.bf16.mxu0 %v2222_v2  ;;  %v2859_v20 = vld [vmem:[%s3260_s9] sm:$0xff]   ;;  %v2866_v21 = vld [vmem:[%s3260_s9 + $0x18] sm:$0xff]   ;;  %v2875_v24 = vld [vmem:[%s3260_s9 + $0x8] sm:$0xff]  }
  0xac   : > { %s492_s3 = scalar_select %p491_p3, %s2827_s23, 31  ;;  %1958 = vmatprep.subr.bf16.mxu1 %v2221_v1  ;;  %1937 = vmatpush3.bf16.msra.mxu0 %v2222_v2  ;;  %v2883_v28 = vld [vmem:[%s3260_s9 + $0x28] sm:$0xff]   ;;  %v2889_v30 = vld [vmem:[%s3260_s9 + $0x20] sm:$0xff]   ;;  %v2896_v31 = vld [vmem:[%s3260_s9 + $0x38] sm:$0xff]  }
  0xad   : > { %s1768_s15 = sshll.u32 %s490_s25, 5  ;;  %p501_p8 = scmp.lt.s32.totalorder %s1770_s11, 7  ;;  %1938 = vmatprep.subr.bf16.mxu0 %v2223_v3  ;;  %v2905_v34 = vld [vmem:[%s3260_s9 + $0x30] sm:$0xff]   ;;  %v1786_v44 = vld [vmem:[#allocation8] ss:$0 sm:$0xff] }
  0xae   : > { %s494_s13 = sadd.s32 %s1768_s15, %s492_s3  ;;  %s1771_s24 = sshll.u32 %s490_s25, 3  ;;  %v2916_v55 = vld [vmem:[#allocation5] ss:$0 sm:$0xff] }
  0xaf   : > { %s1769_s20 = sshll.u32 %s494_s13, 3  ;;  %s3316_s11 = smov (!%p501_p8, %s1770_s11), 7  ;;  %1959 = vmatpush3.bf16.msra.mxu1 %v2221_v1 }
  0xb0   : > { %s2837_s19 = scalar_lea.vmem %s3251_s0, %s1769_s20  ;;  %s504_s29 = sadd.s32 %s1771_s24, %s3316_s11  ;;  %1939 = vmatpush3.bf16.msra.mxu0 %v2223_v3 }
  0xb1   : > { %s1772_s30 = sshll.u32 %s504_s29, 3  ;;  %v515_v4 = vld [vmem:[%s2837_s19] sm:$0xff]  ;;  %v516_v5 = vld [vmem:[%s2837_s19 + $0x8] sm:$0xff]  ;;  %v517_v6 = vld [vmem:[%s2837_s19 + $0x10] sm:$0xff]  ;;  %s2553_s3 = smov 32  }
  0xb2   : > { %s506_s26 = scalar_lea.vmem %s3252_s1, %s1772_s30  ;;  %v531_v7 = vpack.c.bf16 %v516_v5, %v515_v4  ;;  %v518_v8 = vld [vmem:[%s2837_s19 + $0x18] sm:$0xff]  ;;  %v519_v9 = vld [vmem:[%s2837_s19 + $0x20] sm:$0xff]  ;;  %v520_v10 = vld [vmem:[%s2837_s19 + $0x28] sm:$0xff]  ;;  %854 = vrot.lane.b32.xlu1 %v2854_v19, %s2553_s3  ;;  %p508_p10 = scmp.lt.s32.totalorder %s2528_s16, 1 }
  0xb3   : > { %v539_v11 = vld [vmem:[%s506_s26] sm:$0xff]  ;;  %v540_v12 = vld [vmem:[%s506_s26 + $0x8] sm:$0xff]  ;;  %v541_v13 = vld [vmem:[%s506_s26 + $0x10] sm:$0xff]  ;;  %v532_v17 = vpack.c.bf16 %v518_v8, %v517_v6  ;;  %v533_v18 = vpack.c.bf16 %v520_v10, %v519_v9  ;;  %850 = vrot.lane.b32.xlu0 %v2859_v20, %s2553_s3  ;;  %s1820_s21 = sshll.u32 %s2532_s17, 5  ;;  %p3296_p4 = scmp.ne.s32.totalorder %s3283_s27, 0 }
  0xb4   : > { %v543_v14 = vpack.c.bf16 %v540_v12, %v539_v11  ;;  %v542_v15 = vld [vmem:[%s506_s26 + $0x18] sm:$0xff]  ;;  %1940 = vmatprep.mubr.msk.bf16.mxu0 %vm568_vm0, %v531_v7  ;;  %v521_v22 = vld [vmem:[%s2837_s19 + $0x30] sm:$0xff]  ;;  %v523_v25 = vld [vmem:[%s2837_s19 + $0x40] sm:$0xff]  ;;  %s3318_s16 = smov (!%p508_p10, %s2528_s16), 1  ;;  %s1586_s24 = sadd.s32 %s1820_s21, %s2827_s23 }
  0xb5   : > { %v544_v16 = vpack.c.bf16 %v542_v15, %v541_v13  ;;  %1941 = vmatmul.mubr.msk.bf16.vlgmr.msra.gmra.mrb[0].mxu0 %vm568_vm0, %v532_v17  ;;  %v522_v23 = vld [vmem:[%s2837_s19 + $0x38] sm:$0xff]  ;;  %v524_v26 = vld [vmem:[%s2837_s19 + $0x48] sm:$0xff]  ;;  %v525_v32 = vld [vmem:[%s2837_s19 + $0x50] sm:$0xff]  ;;  %s1824_s5 = sshll.u32 %s3318_s16, 6  ;;  %s485_s16 = sand.u32 1, %s2520_s14  }
  0xb6   : > { %1960 = vmatprep.mubr.msk.bf16.mxu1 %vm568_vm0, %v543_v14  ;;  %1944 = vmatprep.mubr.msk.bf16.mxu0 %vm568_vm0, %v533_v18  ;;  %v534_v27 = vpack.c.bf16 %v522_v23, %v521_v22  ;;  %v535_v29 = vpack.c.bf16 %v524_v26, %v523_v25  ;;  %v526_v33 = vld [vmem:[%s2837_s19 + $0x58] sm:$0xff]  ;;  %v527_v35 = vld [vmem:[%s2837_s19 + $0x60] sm:$0xff]  ;;  %v528_v36 = vld [vmem:[%s2837_s19 + $0x68] sm:$0xff]  ;;  %s1766_s15 = sshll.u32 %s485_s16, 7  ;;  %s1821_s17 = sshll.u32 %s1586_s24, 7 }
  0xb7   : > { %1961 = vmatmul.mubr.msk.bf16.vlgmr.msra.gmra.mrb[0].mxu1 %vm568_vm0, %v544_v16  ;;  %856 = vrot.lane.b32.xlu1 %v2866_v21, %s2553_s3  ;;  %v536_v37 = vpack.c.bf16 %v526_v33, %v525_v32  ;;  %v537_v38 = vpack.c.bf16 %v528_v36, %v527_v35  ;;  %v529_v39 = vld [vmem:[%s2837_s19 + $0x70] sm:$0xff]  ;;  %v530_v40 = vld [vmem:[%s2837_s19 + $0x78] sm:$0xff]  ;;  %s2554_s19 = smov 96   ;;  %s3153_s12 = scalar_lea.vmem [#allocation11], %s1766_s15 }
  0xb8   : > { %852 = vrot.lane.b32.xlu0 %v2875_v24, %s2553_s3  ;;  %v538_v41 = vpack.c.bf16 %v530_v40, %v529_v39  ;;  %s1589_s29 = sshll.u32 %s3153_s12, 4  ;;  %s3185_s23 = scalar_lea.hbm %s3261_s10, %s1821_s17  ;;  %s3191_s29 = int_to_ptr.vmem [resolvable:$true] %s1589_s29 }
  0xb9   : > { %s3199_s22 = scalar_lea.sflag [#allocation4], %s485_s16  ;;  %s2438_s26 = scalar_lea.vmem %s3191_s29, 2048 }
  0xba   : > { %p2439_p12 = scmp.ne.s32.totalorder %s3191_s29, %s2438_s26  ;;  %s2555_s18 = smov [#allocation11]  }
  0xbb   : > { %860 = vrot.lane.b32.xlu1 %v2883_v28, %s2553_s3 }
  0xbc   : > { %858 = vrot.lane.b32.xlu0 %v2889_v30, %s2553_s3  ;;  %p2440_p5 = pnand %p2439_p12, %p3296_p4 }
  0xbd   : > { %1945 = vmatmul.mubr.msk.bf16.gmra.mrb[4].mxu0 %vm568_vm0, %v534_v27 }
  0xbe   : > { %1948 = vmatprep.mubr.msk.bf16.mxu0 %vm568_vm0, %v535_v29  ;;  %p2441_p6 = pneg %p2440_p5 }
  0xbf   : > { %864 = vrot.lane.b32.xlu1 %v2896_v31, %s2553_s3 }
  0xc0   : > { %862 = vrot.lane.b32.xlu0 %v2905_v34, %s2553_s3  ;;  %s3011_s3 = scalar_lea.vmem %s3259_s8, %s1824_s5 }
  0xc5   : > { %1949 = vmatmul.mubr.msk.bf16.gmra.mrb[8].mxu0 %vm568_vm0, %v536_v37 }
  0xc6   : > { %1952 = vmatprep.mubr.msk.bf16.mxu0 %vm568_vm0, %v537_v38 }
  0xcd   : > { %1953 = vmatmul.mubr.msk.bf16.gmra.mrb[12].mxu0 %vm568_vm0, %v538_v41 }
 0x124   : > { %v855_v45 = vpop.permute.xlu1 %854 }
 0x125   : > { %v851_v42 = vpop.permute.xlu0 %850 }
 0x129   : > { %v857_v0 = vpop.permute.xlu1 %856 }
 0x12a   : > { %v853_v59 = vpop.permute.xlu0 %852 }
 0x12d   : > { %v861_v17 = vpop.permute.xlu1 %860 }
 0x12e   : > { %v859_v23 = vpop.permute.xlu0 %858 }
 0x188   : > { %v1942_v48 = vpop.f32.mrb[0].mxu0 }
 0x189   : > { %v627_v52 = vpop.f32.mrb[1].mxu0  ;;  %v2924_v62 = vadd.f32 %v1942_v48, %v2916_v55 }
 0x18a   : > { %v1962_v43 = vpop.f32.mrb[0].mxu1  ;;  %v1943_v56 = vpop.f32.mrb[2].mxu0  ;;  %v628_v3 = vadd.f32 %v2916_v55, %v627_v52 }
 0x18b   : > { %v761_v46 = vpop.f32.mrb[1].mxu1  ;;  %v770_v49 = vadd.f32 %v1962_v43, %v1786_v44  ;;  %v630_v58 = vpop.f32.mrb[3].mxu0  ;;  %v2927_v63 = vadd.f32 %v1943_v56, %v2916_v55 }
 0x18c   : > { %v1963_v47 = vpop.f32.mrb[2].mxu1  ;;  %v762_v53 = vadd.f32 %v1786_v44, %v761_v46  ;;  %v631_v4 = vadd.f32 %v2916_v55, %v630_v58 }
 0x18d   : > { %v773_v50 = vadd.f32 %v1963_v47, %v1786_v44  ;;  %v764_v51 = vpop.f32.mrb[3].mxu1  ;;  %v691_v9 = vpack.c.bf16 %v2927_v63, %v2924_v62 }
 0x18e   : > { %v765_v54 = vadd.f32 %v1786_v44, %v764_v51  ;;  %v690_v12 = vpack.c.bf16 %v631_v4, %v628_v3 }
 0x18f   : > { %v2918_v57 = vpack.c.bf16 %v773_v50, %v770_v49 }
 0x190   : > { %v2920_v60 = vpack.c.bf16 %v765_v54, %v762_v53  ;;  %v1946_v7 = vpop.f32.mrb[4].mxu0  ;;  %1980 = vmatprep.mubr.msk.bf16.mxu0 %vm568_vm0, %v690_v12  ;;  %v1857_v12 = vld [vmem:[%s3011_s3 + $0x8] sm:$0xff]  }
 0x191   : > { %v875_v61 = vmul.bf16 %v853_v59, %v2918_v57  ;;  %v843_v6 = vmul.bf16 %v2875_v24, %v2918_v57  ;;  %v877_v8 = vmul.bf16 %v857_v0, %v2918_v57  ;;  %v643_v10 = vpop.f32.mrb[5].mxu0  ;;  %v2947_v14 = vadd.f32 %v1946_v7, %v2916_v55  ;;  %v3004_v7 = vpop.permute.xlu1 %864 }
 0x192   : > { %v874_v1 = vmul.bf16 %v851_v42, %v2920_v60  ;;  %v842_v2 = vmul.bf16 %v2859_v20, %v2920_v60  ;;  %v876_v11 = vmul.bf16 %v855_v45, %v2920_v60  ;;  %v1947_v13 = vpop.f32.mrb[6].mxu0  ;;  %v644_v15 = vadd.f32 %v2916_v55, %v643_v10 }
 0x193   : > { %1157 = vrot.lane.b32.xlu1 %v875_v61, %s2554_s19  ;;  %v646_v16 = vpop.f32.mrb[7].mxu0  ;;  %v655_v18 = vadd.f32 %v1947_v13, %v2916_v55  ;;  %v879_v25 = vmul.bf16 %v861_v17, %v2918_v57  ;;  %v878_v26 = vmul.bf16 %v859_v23, %v2920_v60  ;;  %v942_v32 = vsel %vm568_vm0, %v843_v6, 0  ;;  %v1826_v13 = vld [vmem:[%s3011_s3] sm:$0xff]  }
 0x194   : > { %1155 = vrot.lane.b32.xlu0 %v874_v1, %s2554_s19  ;;  %2084 = vmatprep.subr.msk.bf16.mxu0 %vm568_vm0, %v842_v2  ;;  %v939_v5 = vsel %vm568_vm0, %v842_v2, 0  ;;  %v647_v22 = vadd.f32 %v2916_v55, %v646_v16  ;;  %v844_v33 = vmul.bf16 %v2854_v19, %v2920_v60  ;;  %v845_v46 = vmul.bf16 %v2866_v21, %v2918_v57 }
 0x195   : > { %1965 = vmatpush3.bf16.xpose.msra.mxu0 %v939_v5  ;;  %v693_v27 = vpack.c.bf16 %v655_v18, %v2947_v14  ;;  %v846_v61 = vmul.bf16 %v2889_v30, %v2920_v60  ;;  %v847_v1 = vmul.bf16 %v2883_v28, %v2918_v57  ;;  %v848_v2 = vmul.bf16 %v2905_v34, %v2920_v60 }
 0x196   : > { %2085 = vmatprep.subr.msk.bf16.mxu0 %vm568_vm0, %v843_v6  ;;  %v692_v29 = vpack.c.bf16 %v647_v22, %v644_v15  ;;  %v945_v45 = vsel %vm568_vm0, %v844_v33, 0  ;;  %v948_v59 = vsel %vm568_vm0, %v845_v46, 0  ;;  %v849_v4 = vmul.bf16 %v2896_v31, %v2918_v57  ;;  %v3002_v6 = vpop.permute.xlu0 %862 }
 0x197   : > { %1161 = vrot.lane.b32.xlu1 %v877_v8, %s2554_s19  ;;  %v951_v0 = vsel %vm568_vm0, %v846_v61, 0  ;;  %v957_v3 = vsel %vm568_vm0, %v848_v2, 0  ;;  %v1831_v14 = vunpack.c.l.bf16 %v1857_v12  ;;  %v1827_v15 = vunpack.c.l.bf16 %v1826_v13 }
 0x198   : > { %1159 = vrot.lane.b32.xlu0 %v876_v11, %s2554_s19  ;;  %v1950_v35 = vpop.f32.mrb[8].mxu0  ;;  %v960_v5 = vsel %vm568_vm0, %v849_v4, 0  ;;  %v1832_v22 = vunpack.c.h.bf16 %v1857_v12 }
 0x199   : > { %v668_v36 = vadd.f32 %v1950_v35, %v2916_v55  ;;  %v659_v37 = vpop.f32.mrb[9].mxu0 }
 0x19a   : > { %v660_v38 = vadd.f32 %v2916_v55, %v659_v37  ;;  %v1951_v39 = vpop.f32.mrb[10].mxu0 }
 0x19b   : > { %1165 = vrot.lane.b32.xlu1 %v879_v25, %s2554_s19  ;;  %v671_v40 = vadd.f32 %v1951_v39, %v2916_v55  ;;  %v662_v41 = vpop.f32.mrb[11].mxu0 }
 0x19c   : > { %1163 = vrot.lane.b32.xlu0 %v878_v26, %s2554_s19  ;;  %v663_v42 = vadd.f32 %v2916_v55, %v662_v41 }
 0x19d   : > { %1967 = vmatpush3.bf16.xpose.msra.mxu0 %v942_v32  ;;  %v695_v43 = vpack.c.bf16 %v671_v40, %v668_v36  ;;  %v1828_v32 = vunpack.c.h.bf16 %v1826_v13 }
 0x19e   : > { %2086 = vmatprep.subr.msk.bf16.mxu0 %vm568_vm0, %v844_v33  ;;  %v694_v44 = vpack.c.bf16 %v663_v42, %v660_v38  ;;  %v1859_v33 = vld [vmem:[%s3011_s3 + $0x18] sm:$0xff]  }
 0x19f   : > { %v1839_v38 = vunpack.c.l.bf16 %v1859_v33 }
 0x1a0   : > { %v1954_v47 = vpop.f32.mrb[12].mxu0 }
 0x1a1   : > { %v684_v48 = vadd.f32 %v1954_v47, %v2916_v55  ;;  %v675_v49 = vpop.f32.mrb[13].mxu0 }
 0x1a2   : > { %v676_v50 = vadd.f32 %v2916_v55, %v675_v49  ;;  %v1955_v51 = vpop.f32.mrb[14].mxu0 }
 0x1a3   : > { %v687_v52 = vadd.f32 %v1955_v51, %v2916_v55  ;;  %v678_v53 = vpop.f32.mrb[15].mxu0 }
 0x1a4   : > { %v679_v54 = vadd.f32 %v2916_v55, %v678_v53  ;;  %v954_v55 = vsel %vm568_vm0, %v847_v1, 0  ;;  %v1860_v53 = vld [vmem:[%s3011_s3 + $0x20] sm:$0xff]  }
 0x1a5   : > { %1969 = vmatpush3.bf16.xpose.msra.mxu0 %v945_v45  ;;  %v697_v56 = vpack.c.bf16 %v687_v52, %v684_v48  ;;  %v1861_v45 = vld [vmem:[%s3011_s3 + $0x28] sm:$0xff]  }
 0x1a6   : > { %2087 = vmatprep.subr.msk.bf16.mxu0 %vm568_vm0, %v845_v46  ;;  %v696_v58 = vpack.c.bf16 %v679_v54, %v676_v50  ;;  %v1847_v51 = vunpack.c.l.bf16 %v1861_v45  ;;  %v1848_v12 = vunpack.c.h.bf16 %v1861_v45 }
 0x1ad   : > { %1971 = vmatpush3.bf16.xpose.msra.mxu0 %v948_v59  ;;  %v1863_v59 = vld [vmem:[%s3011_s3 + $0x38] sm:$0xff]  }
 0x1ae   : > { %2088 = vmatprep.subr.msk.bf16.mxu0 %vm568_vm0, %v846_v61  ;;  %v1856_v13 = vunpack.c.h.bf16 %v1863_v59 }
 0x1b5   : > { %1973 = vmatpush3.bf16.xpose.msra.mxu0 %v951_v0 }
 0x1b6   : > { %2089 = vmatprep.subr.msk.bf16.mxu0 %vm568_vm0, %v847_v1 }
 0x1bd   : > { %1975 = vmatpush3.bf16.xpose.msra.mxu0 %v954_v55 }
 0x1be   : > { %2090 = vmatprep.subr.msk.bf16.mxu0 %vm568_vm0, %v848_v2  ;;  %v1855_v2 = vunpack.c.l.bf16 %v1863_v59 }
 0x1c5   : > { %1977 = vmatpush3.bf16.xpose.msra.mxu0 %v957_v3 }
 0x1c6   : > { %2091 = vmatprep.subr.msk.bf16.mxu0 %vm568_vm0, %v849_v4  ;;  %v1862_v4 = vld [vmem:[%s3011_s3 + $0x30] sm:$0xff]  }
 0x1cd   : > { %1979 = vmatpush3.bf16.xpose.msra.mxu0 %v960_v5 }
 0x1d4   : > { %1981 = vmatmul.mubr.msk.bf16.vlgmr.msra.gmra.mrb[16].mxu0 %vm568_vm0, %v691_v9 }
 0x1d5   : > { %1984 = vmatprep.mubr.msk.bf16.mxu0 %vm568_vm0, %v692_v29 }
 0x1dc   : > { %1985 = vmatmul.mubr.msk.bf16.gmra.mrb[20].mxu0 %vm568_vm0, %v693_v27  ;;  %v1858_v27 = vld [vmem:[%s3011_s3 + $0x10] sm:$0xff]  }
 0x1dd   : > { %1988 = vmatprep.mubr.msk.bf16.mxu0 %vm568_vm0, %v694_v44  ;;  %v1835_v35 = vunpack.c.l.bf16 %v1858_v27  ;;  %v1840_v44 = vunpack.c.h.bf16 %v1859_v33  ;;  %v1836_v48 = vunpack.c.h.bf16 %v1858_v27 }
 0x1e4   : > { %1989 = vmatmul.mubr.msk.bf16.gmra.mrb[24].mxu0 %vm568_vm0, %v695_v43 }
 0x1e5   : > { %1992 = vmatprep.mubr.msk.bf16.mxu0 %vm568_vm0, %v696_v58  ;;  %v1844_v58 = vunpack.c.h.bf16 %v1860_v53 }
 0x1ec   : > { %1993 = vmatmul.mubr.msk.bf16.gmra.mrb[28].mxu0 %vm568_vm0, %v697_v56 }
 0x205   : > { %v1158_v62 = vpop.permute.xlu1 %1157 }
 0x206   : > { %v1156_v8 = vpop.permute.xlu0 %1155 }
 0x207   : > { %1996 = vmatprep.subr.bf16.mxu1 %v1156_v8 }
 0x208   : > { %1997 = vmatpush3.bf16.msra.mxu1 %v1156_v8  ;;  %v1851_v8 = vunpack.c.l.bf16 %v1862_v4 }
 0x209   : > { %1998 = vmatprep.subr.bf16.mxu1 %v1158_v62  ;;  %v1162_v9 = vpop.permute.xlu1 %1161 }
 0x20a   : > { %v1160_v63 = vpop.permute.xlu0 %1159 }
 0x20c   : > { %1999 = vmatpush3.bf16.msra.mxu1 %v1158_v62  ;;  %v880_v62 = vmul.bf16 %v3002_v6, %v2920_v60  ;;  %v1852_v6 = vunpack.c.h.bf16 %v1862_v4 }
 0x20d   : > { %2000 = vmatprep.subr.bf16.mxu1 %v1160_v63  ;;  %v1166_v11 = vpop.permute.xlu1 %1165 }
 0x20e   : > { %v1164_v10 = vpop.permute.xlu0 %1163 }
 0x210   : > { %2001 = vmatpush3.bf16.msra.mxu1 %v1160_v63 }
 0x211   : > { %2002 = vmatprep.subr.bf16.mxu1 %v1162_v9 }
 0x214   : > { %2003 = vmatpush3.bf16.msra.mxu1 %v1162_v9  ;;  %v881_v9 = vmul.bf16 %v3004_v7, %v2918_v57 }
 0x215   : > { %2004 = vmatprep.subr.bf16.mxu1 %v1164_v10 }
 0x218   : > { %2005 = vmatpush3.bf16.msra.mxu1 %v1164_v10  ;;  %v1843_v10 = vunpack.c.l.bf16 %v1860_v53 }
 0x219   : > { %2006 = vmatprep.subr.bf16.mxu1 %v1166_v11 }
 0x21c   : > { %2007 = vmatpush3.bf16.msra.mxu1 %v1166_v11 }
 0x2a7   : > { %v1982_v16 = vpop.f32.mrb[16].mxu0 }
 0x2a8   : > { %v3015_v17 = vadd.f32 %v1982_v16, %v1831_v14  ;;  %v996_v18 = vpop.f32.mrb[17].mxu0 }
 0x2a9   : > { %v3017_v23 = vadd.f32 %v1827_v15, %v996_v18  ;;  %v1983_v25 = vpop.f32.mrb[18].mxu0 }
 0x2aa   : > { %1063 = vmax.xlane.f32.xlu1 %v3015_v17  ;;  %v999_v26 = vpop.f32.mrb[19].mxu0  ;;  %v3022_v29 = vadd.f32 %v1983_v25, %v1832_v22 }
 0x2ab   : > { %1059 = vmax.xlane.f32.xlu0 %v3017_v23  ;;  %v3026_v37 = vadd.f32 %v1828_v32, %v999_v26 }
 0x2ae   : > { %1065 = vmax.xlane.f32.xlu1 %v3022_v29 }
 0x2af   : > { %v1986_v36 = vpop.f32.mrb[20].mxu0 }
 0x2b0   : > { %v1012_v39 = vpop.f32.mrb[21].mxu0  ;;  %v3032_v43 = vadd.f32 %v1986_v36, %v1839_v38 }
 0x2b1   : > { %v3028_v40 = vadd.f32 %v1835_v35, %v1012_v39  ;;  %v1987_v41 = vpop.f32.mrb[22].mxu0 }
 0x2b2   : > { %v1015_v42 = vpop.f32.mrb[23].mxu0  ;;  %1061 = vmax.xlane.f32.xlu1 %v3026_v37  ;;  %v3036_v47 = vadd.f32 %v1987_v41, %v1840_v44 }
 0x2b3   : > { %1067 = vmax.xlane.f32.xlu0 %v3028_v40  ;;  %v1016_v54 = vadd.f32 %v1836_v48, %v1015_v42 }
 0x2b6   : > { %1071 = vmax.xlane.f32.xlu1 %v3032_v43 }
 0x2b7   : > { %v1990_v46 = vpop.f32.mrb[24].mxu0 }
 0x2b8   : > { %v1028_v49 = vpop.f32.mrb[25].mxu0  ;;  %v3040_v56 = vadd.f32 %v1990_v46, %v1847_v51 }
 0x2b9   : > { %v1991_v50 = vpop.f32.mrb[26].mxu0  ;;  %v3060_v11 = vadd.f32 %v1843_v10, %v1028_v49 }
 0x2ba   : > { %1073 = vmax.xlane.f32.xlu1 %v3036_v47  ;;  %v1031_v52 = vpop.f32.mrb[27].mxu0  ;;  %v3063_v60 = vadd.f32 %v1991_v50, %v1848_v12 }
 0x2bb   : > { %v3044_v55 = vadd.f32 %v1844_v58, %v1031_v52 }
 0x2be   : > { %1069 = vmax.xlane.f32.xlu1 %v1016_v54 }
 0x2bf   : > { %v1994_v61 = vpop.f32.mrb[28].mxu0 }
 0x2c0   : > { %v1044_v0 = vpop.f32.mrb[29].mxu0  ;;  %v3048_v5 = vadd.f32 %v1994_v61, %v1855_v2 }
 0x2c1   : > { %v1995_v1 = vpop.f32.mrb[30].mxu0  ;;  %v3054_v63 = vadd.f32 %v1851_v8, %v1044_v0 }
 0x2c2   : > { %1079 = vmax.xlane.f32.xlu1 %v3040_v56  ;;  %v1047_v3 = vpop.f32.mrb[31].mxu0  ;;  %v3069_v15 = vadd.f32 %v1995_v1, %v1856_v13 }
 0x2c3   : > { %v3066_v14 = vadd.f32 %v1852_v6, %v1047_v3 }
 0x2c6   : > { %1077 = vmax.xlane.f32.xlu1 %v3044_v55 }
 0x2c9   : > { %1167 = vrot.lane.b32.xlu0 %v880_v62, %s2554_s19 }
 0x2ca   : > { %1087 = vmax.xlane.f32.xlu1 %v3048_v5 }
 0x2ce   : > { %1083 = vmax.xlane.f32.xlu1 %v3054_v63 }
 0x2df   : > { %1169 = vrot.lane.b32.xlu1 %v881_v9, %s2554_s19  ;;  %s2442_s19 = sshll.u32 %s2555_s18, 4  ;;  %s2443_s19 = int_to_ptr.vmem [resolvable:$false] %s2442_s19 }
 0x2e0   : > { %s2444_s5 = scalar_lea.vmem %s2443_s19, 4096  ;;  %p2445_p7 = scmp.lt.s32.totalorder %s3191_s29, %s2443_s19 }
 0x2e1   : > { %p2446_p9 = scmp.lt.s32.totalorder %s2444_s5, %s2438_s26 }
 0x2e3   : > { %p2447_p11 = por %p2446_p9, %p2445_p7 }
 0x2e5   : > { %p2448_p13 = pnand %p2447_p11, %p2441_p6 }
 0x2e8   : > { %1075 = vmax.xlane.f32.xlu0 %v3060_v11 }
 0x2ec   : > { %1081 = vmax.xlane.f32.xlu0 %v3063_v60 }
 0x2f0   : > { %1085 = vmax.xlane.f32.xlu0 %v3066_v14 }
 0x2f4   : > { %1089 = vmax.xlane.f32.xlu0 %v3069_v15 }
 0x337   : > { %v1064_v57 = vpop.xlane.xlu1 %1063 }
 0x338   : > { %v1060_v7 = vpop.xlane.xlu0 %1059  ;;  %v1093_v44 = vsub.f32 %v3015_v17, %v1064_v57 }
 0x339   : > { %v1091_v16 = vsub.f32 %v3017_v23, %v1060_v7 }
 0x33a   : > { %v1111_v50 = vmul.f32 1.442695, %v1093_v44 }
 0x33b   : > { %v1066_v18 = vpop.xlane.xlu1 %1065  ;;  %v1107_v22 = vmul.f32 1.442695, %v1091_v16 }
 0x33c   : > { %v1094_v41 = vsub.f32 %v3022_v29, %v1066_v18 }
 0x33d   : > { %2234 = vpow2.f32 %v1107_v22 }
 0x33e   : > { %v1113_v48 = vmul.f32 1.442695, %v1094_v41 }
 0x33f   : > { %v1062_v25 = vpop.xlane.xlu1 %1061 }
 0x340   : > { %v1092_v26 = vsub.f32 %v3026_v37, %v1062_v25  ;;  %v1068_v27 = vpop.xlane.xlu0 %1067 }
 0x341   : > { %v1095_v37 = vsub.f32 %v3028_v40, %v1068_v27 }
 0x342   : > { %v1109_v32 = vmul.f32 1.442695, %v1092_v26 }
 0x343   : > { %v1072_v33 = vpop.xlane.xlu1 %1071  ;;  %v1115_v52 = vmul.f32 1.442695, %v1095_v37 }
 0x344   : > { %2236 = vpow2.f32 %v1109_v32  ;;  %v1168_v35 = vpop.permute.xlu0 %1167  ;;  %v1097_v29 = vsub.f32 %v3032_v43, %v1072_v33 }
 0x345   : > { %2008 = vmatprep.subr.bf16.mxu1 %v1168_v35  ;;  %2238 = vpow2.f32 %v1113_v48 }
 0x346   : > { %2009 = vmatpush3.bf16.msra.mxu1 %v1168_v35  ;;  %v1119_v58 = vmul.f32 1.442695, %v1097_v29 }
 0x347   : > { %v1074_v36 = vpop.xlane.xlu1 %1073  ;;  %v2235_v39 = vpop.eup %2234 }
 0x348   : > { %v1098_v53 = vsub.f32 %v3036_v47, %v1074_v36  ;;  %v2233_v36 = vld [vmem:[#allocation10 + $0x8] sm:$0xff]  }
 0x34b   : > { %v1070_v38 = vpop.xlane.xlu1 %1069 }
 0x34c   : > { %v1096_v23 = vsub.f32 %v1016_v54, %v1070_v38  ;;  %v1121_v54 = vmul.f32 1.442695, %v1098_v53 }
 0x34e   : > { %v2237_v42 = vpop.eup %2236  ;;  %v1117_v49 = vmul.f32 1.442695, %v1096_v23 }
 0x34f   : > { %v1080_v45 = vpop.xlane.xlu1 %1079  ;;  %v3076_v46 = vpack.c.bf16 %v2237_v42, %v2235_v39  ;;  %v2239_v40 = vpop.eup %2238 }
 0x350   : > { %2240 = vpow2.f32 %v1117_v49 }
 0x351   : > { %2012 = vmatprep.mubr.bf16.mxu1 %v3076_v46  ;;  %2242 = vpow2.f32 %v1111_v50 }
 0x352   : > { %2244 = vpow2.f32 %v1115_v52 }
 0x353   : > { %v1078_v51 = vpop.xlane.xlu1 %1077  ;;  %2246 = vpow2.f32 %v1121_v54 }
 0x354   : > { %2248 = vpow2.f32 %v1119_v58  ;;  %v1100_v62 = vsub.f32 %v3044_v55, %v1078_v51 }
 0x356   : > { %v1125_v9 = vmul.f32 1.442695, %v1100_v62 }
 0x357   : > { %v1088_v17 = vpop.xlane.xlu1 %1087 }
 0x358   : > { %2250 = vpow2.f32 %v1125_v9 }
 0x35a   : > { %v2241_v0 = vpop.eup %2240 }
 0x35b   : > { %v1084_v59 = vpop.xlane.xlu1 %1083  ;;  %v2243_v1 = vpop.eup %2242 }
 0x35c   : > { %v2245_v2 = vpop.eup %2244  ;;  %v3082_v3 = vpack.c.bf16 %v2239_v40, %v2243_v1  ;;  %v1103_v6 = vsub.f32 %v3054_v63, %v1084_v59 }
 0x35d   : > { %v3085_v47 = vpack.c.bf16 %v2241_v0, %v2245_v2  ;;  %v2247_v43 = vpop.eup %2246 }
 0x35e   : > { %v2249_v4 = vpop.eup %2248 }
 0x35f   : > { %v1170_v61 = vpop.permute.xlu1 %1169  ;;  %v1142_v8 = vpack.c.bf16 %v2247_v43, %v2249_v4 }
 0x360   : > { %2010 = vmatprep.subr.bf16.mxu1 %v1170_v61 }
 0x361   : > { %2011 = vmatpush3.bf16.msra.mxu1 %v1170_v61 }
 0x362   : > { %2028 = vmatprep.subr.bf16.mxu1 %v2859_v20  ;;  %v2251_v16 = vpop.eup %2250 }
 0x364   : > { %2013 = vmatmul.mubr.bf16.vlgmr.msra.gmra.mrb[4].mxu1 %v3082_v3 }
 0x365   : > { %2016 = vmatprep.mubr.bf16.mxu1 %v3085_v47  ;;  %2029 = vmatpush3.bf16.msra.mxu1 %v2859_v20  ;;  %v1101_v20 = vsub.f32 %v3040_v56, %v1080_v45 }
 0x366   : > { %2030 = vmatprep.subr.bf16.mxu1 %v2875_v24 }
 0x369   : > { %2031 = vmatpush3.bf16.msra.mxu1 %v2875_v24 }
 0x36a   : > { %2032 = vmatprep.subr.bf16.mxu1 %v2854_v19 }
 0x36c   : > { %2017 = vmatmul.mubr.bf16.gmra.mrb[8].mxu1 %v1142_v8 }
 0x36d   : > { %2033 = vmatpush3.bf16.msra.mxu1 %v2854_v19  ;;  %v1127_v19 = vmul.f32 1.442695, %v1101_v20 }
 0x36e   : > { %2034 = vmatprep.subr.bf16.mxu1 %v2866_v21 }
 0x371   : > { %2035 = vmatpush3.bf16.msra.mxu1 %v2866_v21 }
 0x372   : > { %2036 = vmatprep.subr.bf16.mxu1 %v2889_v30 }
 0x375   : > { %v1076_v10 = vpop.xlane.xlu0 %1075  ;;  %2037 = vmatpush3.bf16.msra.mxu1 %v2889_v30  ;;  %v1105_v30 = vsub.f32 %v3048_v5, %v1088_v17 }
 0x376   : > { %v1099_v24 = vsub.f32 %v3060_v11, %v1076_v10  ;;  %2038 = vmatprep.subr.bf16.mxu1 %v2883_v28  ;;  %v1131_v11 = vmul.f32 1.442695, %v1103_v6 }
 0x378   : > { %v1123_v12 = vmul.f32 1.442695, %v1099_v24 }
 0x379   : > { %v1082_v55 = vpop.xlane.xlu0 %1081  ;;  %2039 = vmatpush3.bf16.msra.mxu1 %v2883_v28  ;;  %v1135_v28 = vmul.f32 1.442695, %v1105_v30 }
 0x37a   : > { %2252 = vpow2.f32 %v1123_v12  ;;  %v1102_v21 = vsub.f32 %v3063_v60, %v1082_v55  ;;  %2040 = vmatprep.subr.bf16.mxu1 %v2905_v34 }
 0x37b   : > { %2254 = vpow2.f32 %v1127_v19 }
 0x37c   : > { %v1129_v56 = vmul.f32 1.442695, %v1102_v21 }
 0x37d   : > { %v1086_v13 = vpop.xlane.xlu0 %1085  ;;  %2041 = vmatpush3.bf16.msra.mxu1 %v2905_v34 }
 0x37e   : > { %2256 = vpow2.f32 %v1129_v56  ;;  %v1104_v57 = vsub.f32 %v3066_v14, %v1086_v13  ;;  %2042 = vmatprep.subr.bf16.mxu1 %v2896_v31 }
 0x37f   : > { %2258 = vpow2.f32 %v1131_v11 }
 0x380   : > { %v1133_v63 = vmul.f32 1.442695, %v1104_v57 }
 0x381   : > { %v1090_v7 = vpop.xlane.xlu0 %1089  ;;  %2043 = vmatpush3.bf16.msra.mxu1 %v2896_v31 }
 0x382   : > { %2260 = vpow2.f32 %v1133_v63  ;;  %v1106_v60 = vsub.f32 %v3069_v15, %v1090_v7  ;;  %v2232_v15 = vld [vmem:[#allocation10] sm:$0xff]  }
 0x383   : > { %2262 = vpow2.f32 %v1135_v28  ;;  %2060 = vmatprep.subr.bf16.mxu0 %v2232_v15  ;;  %2080 = vmatprep.subr.bf16.mxu1 %v2232_v15 }
 0x384   : > { %v2253_v5 = vpop.eup %2252  ;;  %v1137_v18 = vmul.f32 1.442695, %v1106_v60  ;;  %2061 = vmatpush3.bf16.msra.mxu0 %v2232_v15 }
 0x385   : > { %v1143_v22 = vpack.c.bf16 %v2251_v16, %v2253_v5  ;;  %v2255_v34 = vpop.eup %2254  ;;  %2062 = vmatprep.subr.bf16.mxu0 %v2233_v36 }
 0x386   : > { %2264 = vpow2.f32 %v1137_v18 }
 0x387   : > { %2020 = vmatprep.mubr.bf16.mxu1 %v1143_v22 }
 0x388   : > { %v2257_v14 = vpop.eup %2256  ;;  %2063 = vmatpush3.bf16.msra.mxu0 %v2233_v36 }
 0x389   : > { %v1144_v25 = vpack.c.bf16 %v2257_v14, %v2255_v34  ;;  %v2259_v26 = vpop.eup %2258 }
 0x38b   : > { %2021 = vmatmul.mubr.bf16.gmra.mrb[12].mxu1 %v1144_v25 }
 0x38c   : > { %v2261_v27 = vpop.eup %2260 }
 0x38d   : > { %v1145_v32 = vpack.c.bf16 %v2261_v27, %v2259_v26  ;;  %v2263_v33 = vpop.eup %2262 }
 0x38f   : > { %2024 = vmatprep.mubr.bf16.mxu1 %v1145_v32 }
 0x390   : > { %v2265_v31 = vpop.eup %2264 }
 0x391   : > { %v1146_v35 = vpack.c.bf16 %v2265_v31, %v2263_v33 }
 0x393   : > { %2025 = vmatmul.mubr.bf16.gmra.mrb[16].mxu1 %v1146_v35 }
 0x394   : > { %2044 = vmatprep.mubr.bf16.mxu1 %v3076_v46 }
 0x39b   : > { %2045 = vmatmul.mubr.bf16.vlgmr.msra.gmra.mrb[20].mxu1 %v3082_v3 }
 0x39c   : > { %2048 = vmatprep.mubr.bf16.mxu1 %v3085_v47  ;;  %2082 = vmatpush3.bf16.msra.mxu1 %v2232_v15 }
 0x39d   : > { %2081 = vmatprep.subr.bf16.mxu1 %v2233_v36 }
 0x3a0   : > { %2083 = vmatpush3.bf16.msra.mxu1 %v2233_v36 }
 0x3a3   : > { %2049 = vmatmul.mubr.bf16.gmra.mrb[24].mxu1 %v1142_v8 }
 0x3a4   : > { %2052 = vmatprep.mubr.bf16.mxu1 %v1143_v22 }
 0x3ab   : > { %2053 = vmatmul.mubr.bf16.gmra.mrb[28].mxu1 %v1144_v25 }
 0x3ac   : > { %2056 = vmatprep.mubr.bf16.mxu1 %v1145_v32 }
 0x3b3   : > { %2057 = vmatmul.mubr.bf16.gmra.mrb[32].mxu1 %v1146_v35 }
 0x437   : > { %v2014_v38 = vpop.f32.mrb[4].mxu1 }
 0x438   : > { %v1213_v39 = vpop.f32.mrb[5].mxu1 }
 0x439   : > { %v2015_v41 = vpop.f32.mrb[6].mxu1 }
 0x43a   : > { %v1216_v42 = vpop.f32.mrb[7].mxu1 }
 0x43f   : > { %v2018_v23 = vpop.f32.mrb[8].mxu1 }
 0x440   : > { %v1229_v44 = vpop.f32.mrb[9].mxu1 }
 0x441   : > { %v2019_v45 = vpop.f32.mrb[10].mxu1 }
 0x442   : > { %v1232_v46 = vpop.f32.mrb[11].mxu1 }
 0x45e   : > { %v3115_v37 = vpop.f32.mrb[12].mxu1 }
 0x45f   : > { %v3117_v48 = vpop.f32.mrb[13].mxu1 }
 0x460   : > { %v3119_v49 = vpop.f32.mrb[14].mxu1 }
 0x461   : > { %v3121_v50 = vpop.f32.mrb[15].mxu1 }
 0x466   : > { %v3123_v51 = vpop.f32.mrb[16].mxu1 }
 0x467   : > { %v3125_v52 = vpop.f32.mrb[17].mxu1 }
 0x468   : > { %v3127_v53 = vpop.f32.mrb[18].mxu1 }
 0x469   : > { %v3129_v29 = vpop.f32.mrb[19].mxu1 }
 0x46e   : > { %v2046_v17 = vpop.f32.mrb[20].mxu1 }
 0x46f   : > { %2266 = vrcp.f32 %v2046_v17  ;;  %v1310_v54 = vpop.f32.mrb[21].mxu1 }
 0x470   : > { %2268 = vrcp.f32 %v1310_v54  ;;  %v2047_v58 = vpop.f32.mrb[22].mxu1 }
 0x471   : > { %2270 = vrcp.f32 %v2047_v58  ;;  %v1313_v59 = vpop.f32.mrb[23].mxu1 }
 0x472   : > { %2272 = vrcp.f32 %v1313_v59 }
 0x476   : > { %v2050_v40 = vpop.f32.mrb[24].mxu1 }
 0x477   : > { %2274 = vrcp.f32 %v2050_v40  ;;  %v1326_v61 = vpop.f32.mrb[25].mxu1 }
 0x478   : > { %2276 = vrcp.f32 %v1326_v61  ;;  %v2051_v0 = vpop.f32.mrb[26].mxu1 }
 0x479   : > { %v2267_v1 = vpop.eup %2266  ;;  %2278 = vrcp.f32 %v2051_v0  ;;  %v1329_v2 = vpop.f32.mrb[27].mxu1 }
 0x47a   : > { %v2269_v3 = vpop.eup %2268  ;;  %v1391_v47 = vmul.f32 %v2267_v1, %v2014_v38  ;;  %2280 = vrcp.f32 %v1329_v2 }
 0x47b   : > { %v2271_v43 = vpop.eup %2270  ;;  %v1389_v4 = vmul.f32 %v2269_v3, %v1213_v39 }
 0x47c   : > { %v2273_v8 = vpop.eup %2272  ;;  %v1392_v62 = vmul.f32 %v2271_v43, %v2015_v41 }
 0x47d   : > { %v1390_v20 = vmul.f32 %v2273_v8, %v1216_v42 }
 0x47e   : > { %v1406_v9 = vpack.c.bf16 %v1392_v62, %v1391_v47  ;;  %v2054_v10 = vpop.f32.mrb[28].mxu1 }
 0x47f   : > { %2282 = vrcp.f32 %v2054_v10  ;;  %v1342_v24 = vpop.f32.mrb[29].mxu1  ;;  %v1405_v12 = vpack.c.bf16 %v1390_v20, %v1389_v4 }
 0x480   : > { %2284 = vrcp.f32 %v1342_v24  ;;  %v2055_v19 = vpop.f32.mrb[30].mxu1 }
 0x481   : > { %v2275_v6 = vpop.eup %2274  ;;  %2286 = vrcp.f32 %v2055_v19  ;;  %v1345_v55 = vpop.f32.mrb[31].mxu1  ;;  %2064 = vmatprep.mubr.msk.bf16.mxu0 %vm568_vm0, %v1405_v12 }
 0x482   : > { %v2277_v21 = vpop.eup %2276  ;;  %2288 = vrcp.f32 %v1345_v55  ;;  %2065 = vmatmul.mubr.msk.bf16.vlgmr.msra.gmra.mrb[32].mxu0 %vm568_vm0, %v1406_v9  ;;  %v1395_v56 = vmul.f32 %v2275_v6, %v2018_v23 }
 0x483   : > { %v2279_v30 = vpop.eup %2278  ;;  %v1393_v11 = vmul.f32 %v2277_v21, %v1229_v44 }
 0x484   : > { %v2281_v13 = vpop.eup %2280  ;;  %v1396_v57 = vmul.f32 %v2279_v30, %v2019_v45 }
 0x485   : > { %v1394_v63 = vmul.f32 %v2281_v13, %v1232_v46 }
 0x486   : > { %v2058_v28 = vpop.f32.mrb[32].mxu1  ;;  %v1408_v7 = vpack.c.bf16 %v1396_v57, %v1395_v56 }
 0x487   : > { %2290 = vrcp.f32 %v2058_v28  ;;  %v1358_v60 = vpop.f32.mrb[33].mxu1  ;;  %v1407_v16 = vpack.c.bf16 %v1394_v63, %v1393_v11 }
 0x488   : > { %2292 = vrcp.f32 %v1358_v60  ;;  %v2059_v5 = vpop.f32.mrb[34].mxu1 }
 0x489   : > { %v2283_v18 = vpop.eup %2282  ;;  %2294 = vrcp.f32 %v2059_v5  ;;  %v1361_v22 = vpop.f32.mrb[35].mxu1  ;;  %2068 = vmatprep.mubr.msk.bf16.mxu0 %vm568_vm0, %v1407_v16 }
 0x48a   : > { %v2285_v34 = vpop.eup %2284  ;;  %v1399_v14 = vmul.f32 %v2283_v18, %v3115_v37  ;;  %2296 = vrcp.f32 %v1361_v22  ;;  %2069 = vmatmul.mubr.msk.bf16.gmra.mrb[36].mxu0 %vm568_vm0, %v1408_v7  ;;  %v1807_v37 = vld [vmem:[%s3258_s7] ss:$0 sm:$0xff] }
 0x48b   : > { %v2287_v25 = vpop.eup %2286  ;;  %v1397_v26 = vmul.f32 %v2285_v34, %v3117_v48 }
 0x48c   : > { %v2289_v27 = vpop.eup %2288  ;;  %v1400_v32 = vmul.f32 %v2287_v25, %v3119_v49 }
 0x48d   : > { %v1398_v33 = vmul.f32 %v2289_v27, %v3121_v50 }
 0x48e   : > { %v1410_v31 = vpack.c.bf16 %v1400_v32, %v1399_v14 }
 0x48f   : > { %v1409_v35 = vpack.c.bf16 %v1398_v33, %v1397_v26 }
 0x491   : > { %v2291_v15 = vpop.eup %2290  ;;  %2072 = vmatprep.mubr.msk.bf16.mxu1 %vm568_vm0, %v1409_v35 }
 0x492   : > { %v2293_v36 = vpop.eup %2292  ;;  %2073 = vmatmul.mubr.msk.bf16.vlgmr.msra.gmra.mrb[36].mxu1 %vm568_vm0, %v1410_v31  ;;  %v1403_v38 = vmul.f32 %v2291_v15, %v3123_v51 }
 0x493   : > { %v2295_v39 = vpop.eup %2294  ;;  %v1401_v41 = vmul.f32 %v2293_v36, %v3125_v52 }
 0x494   : > { %v2297_v42 = vpop.eup %2296  ;;  %v1404_v23 = vmul.f32 %v2295_v39, %v3127_v53 }
 0x495   : > { %v1402_v44 = vmul.f32 %v2297_v42, %v3129_v29 }
 0x496   : > { %v1412_v45 = vpack.c.bf16 %v1404_v23, %v1403_v38 }
 0x497   : > { %v1411_v46 = vpack.c.bf16 %v1402_v44, %v1401_v41 }
 0x499   : > { %2076 = vmatprep.mubr.msk.bf16.mxu1 %vm568_vm0, %v1411_v46 }
 0x49a   : > { %2077 = vmatmul.mubr.msk.bf16.gmra.mrb[40].mxu1 %vm568_vm0, %v1412_v45 }
 0x555   : > { %v2066_v48 = vpop.f32.mrb[32].mxu0 }
 0x556   : > { %v1503_v49 = vadd.f32 %v2066_v48, %v1807_v37  ;;  %v1494_v50 = vpop.f32.mrb[33].mxu0 }
 0x557   : > { %v1495_v51 = vadd.f32 %v1807_v37, %v1494_v50  ;;  %v2067_v52 = vpop.f32.mrb[34].mxu0 }
 0x558   : > { %1559 = vst.msk [vmem:[%s3153_s12 + $0x10] sm:$0xff] %vm568_vm0, %v1503_v49  ;;  %v1506_v53 = vadd.f32 %v2067_v52, %v1807_v37  ;;  %v1497_v29 = vpop.f32.mrb[35].mxu0 }
 0x559   : > { %1557 = vst.msk [vmem:[%s3153_s12] sm:$0xff] %vm568_vm0, %v1495_v51  ;;  %v1498_v17 = vadd.f32 %v1807_v37, %v1497_v29 }
 0x55a   : > { %1560 = vst.msk [vmem:[%s3153_s12 + $0x18] sm:$0xff] %vm568_vm0, %v1506_v53 }
 0x55b   : > { %1558 = vst.msk [vmem:[%s3153_s12 + $0x8] sm:$0xff] %vm568_vm0, %v1498_v17 }
 0x55d   : > { %v2070_v54 = vpop.f32.mrb[36].mxu0 }
 0x55e   : > { %v1519_v58 = vadd.f32 %v2070_v54, %v1807_v37  ;;  %v1510_v59 = vpop.f32.mrb[37].mxu0 }
 0x55f   : > { %v1511_v40 = vadd.f32 %v1807_v37, %v1510_v59  ;;  %v2071_v61 = vpop.f32.mrb[38].mxu0 }
 0x560   : > { %1563 = vst.msk [vmem:[%s3153_s12 + $0x30] sm:$0xff] %vm568_vm0, %v1519_v58  ;;  %v1522_v0 = vadd.f32 %v2071_v61, %v1807_v37  ;;  %v1513_v1 = vpop.f32.mrb[39].mxu0 }
 0x561   : > { %1561 = vst.msk [vmem:[%s3153_s12 + $0x20] sm:$0xff] %vm568_vm0, %v1511_v40  ;;  %v1514_v2 = vadd.f32 %v1807_v37, %v1513_v1 }
 0x562   : > { %1564 = vst.msk [vmem:[%s3153_s12 + $0x38] sm:$0xff] %vm568_vm0, %v1522_v0 }
 0x563   : > { %1562 = vst.msk [vmem:[%s3153_s12 + $0x28] sm:$0xff] %vm568_vm0, %v1514_v2 }
 0x565   : > { %v2074_v3 = vpop.f32.mrb[36].mxu1 }
 0x566   : > { %v1535_v47 = vadd.f32 %v2074_v3, %v1807_v37  ;;  %v1526_v43 = vpop.f32.mrb[37].mxu1 }
 0x567   : > { %v1527_v4 = vadd.f32 %v1807_v37, %v1526_v43  ;;  %v2075_v8 = vpop.f32.mrb[38].mxu1 }
 0x568   : > { %1567 = vst.msk [vmem:[%s3153_s12 + $0x50] sm:$0xff] %vm568_vm0, %v1535_v47  ;;  %v1538_v62 = vadd.f32 %v2075_v8, %v1807_v37  ;;  %v1529_v20 = vpop.f32.mrb[39].mxu1 }
 0x569   : > { %1565 = vst.msk [vmem:[%s3153_s12 + $0x40] sm:$0xff] %vm568_vm0, %v1527_v4  ;;  %v1530_v9 = vadd.f32 %v1807_v37, %v1529_v20 }
 0x56a   : > { %1568 = vst.msk [vmem:[%s3153_s12 + $0x58] sm:$0xff] %vm568_vm0, %v1538_v62 }
 0x56b   : > { %1566 = vst.msk [vmem:[%s3153_s12 + $0x48] sm:$0xff] %vm568_vm0, %v1530_v9 }
 0x56d   : > { %v2078_v10 = vpop.f32.mrb[40].mxu1 }
 0x56e   : > { %v1551_v24 = vadd.f32 %v2078_v10, %v1807_v37  ;;  %v1542_v12 = vpop.f32.mrb[41].mxu1 }
 0x56f   : > { %v1543_v19 = vadd.f32 %v1807_v37, %v1542_v12  ;;  %v2079_v6 = vpop.f32.mrb[42].mxu1 }
 0x570   : > { %1571 = vst.msk [vmem:[%s3153_s12 + $0x70] sm:$0xff] %vm568_vm0, %v1551_v24  ;;  %v1554_v55 = vadd.f32 %v2079_v6, %v1807_v37  ;;  %v1545_v21 = vpop.f32.mrb[43].mxu1 }
 0x571   : > { %1569 = vst.msk [vmem:[%s3153_s12 + $0x60] sm:$0xff] %vm568_vm0, %v1543_v19  ;;  %v1546_v56 = vadd.f32 %v1807_v37, %v1545_v21 }
 0x572   : > { %1572 = vst.msk [vmem:[%s3153_s12 + $0x78] sm:$0xff] %vm568_vm0, %v1554_v55 }
 0x573   : > { %1570 = vst.msk [vmem:[%s3153_s12 + $0x68] sm:$0xff] %vm568_vm0, %v1546_v56 }
 0x574   : > { %2451 = shalt.err (!%p2448_p13)
}
 0x575   : > { %s2452_s11 = scalar_lea.hbm %s3185_s23, 2048  ;;  %s2456_s16 = scalar_lea.hbm %s3261_s10, 8192 }
 0x576   : > { %p2453_p1 = scmp.ne.s32.totalorder %s3185_s23, %s2452_s11  ;;  %p2457_p3 = scmp.lt.u32.totalorder %s3185_s23, %s3261_s10 }
 0x577   : > { %p2458_p8 = scmp.lt.u32.totalorder %s2456_s16, %s2452_s11  ;;  %p2460_p12 = scmp.lt.u32.totalorder %s2452_s11, %s3185_s23 }
 0x578   : > { %p2454_p2 = pnand %p2453_p1, %p3296_p4 }
 0x579   : > { %p2459_p10 = por %p2458_p8, %p2457_p3 }
 0x57a   : > { %p2455_p0 = pneg %p2454_p2 }
 0x57b   : > { %p2461_p5 = por %p2460_p12, %p2459_p10 }
 0x57d   : > { %p2462_p6 = pnand %p2461_p5, %p2455_p0 }
 0x57f   : > { %2465 = shalt.err (!%p2462_p6)
}
 0x580   : > { %s2556_s20 = smov 128   ;;  %s2557_s12 = smov 8  }
 0x581   : > { %2112 = dma.vmem_to_hbm [thread:$0]  (%p3296_p4), %s3191_s29, 2048, %s3185_s23, %s3199_s22, %s2556_s20, %s2556_s20, %s2557_s12  }
 0x582 PF: > { %s3297_s21 = sld [smem:[#allocation20_spill]]  ;;  %s3298_s24 = sld [smem:[#allocation16_spill]] }
 0x583   : > { %s3299_s17 = sld [smem:[#allocation23_spill]] }
 0x588   : > { %p2144_p7 = scmp.ge.s32.totalorder %s3297_s21, 2  ;;  %s1604_s30 = sand.u32 1, %s3298_s24  }
 0x589   : > { %p3300_p9 = scmp.ne.s32.totalorder %s3299_s17, 0  ;;  %s1605_s28 = scalar_lea.sflag [#allocation4], %s1604_s30 }
 0x58b   : > { %p2131_p11 = pnand %p2144_p7, %p3300_p9 }
 0x58d   : > { %2511 = dma.done.wait (!%p2131_p11), %s1605_s28, 2048  }
 0x58e   : > { %2513 = vsyncadd (!%p2131_p11), %s1605_s28, 4294965248  ;;  %s26_s20 = sadd.s32 1, %s3297_s21   ;;  %s3301_s26 = sld [smem:[#allocation17_spill]] }
 0x58f   : > { %p23_p13 = scmp.ge.s32.totalorder %s26_s20, 6   ;;  %s3302_s15 = sld [smem:[#allocation24_spill]] }
 0x590   : > { %s3303_s16 = sld [smem:[#allocation18_spill]]  ;;  %s3304_s17 = sld [smem:[#allocation19_spill]] }
 0x591   : > { %s3305_s18 = sld [smem:[#allocation21_spill]]  ;;  %s3306_s19 = sld [smem:[#allocation22_spill]] }
 0x592   : > { %s3307_s13 = smov %s2520_s14  ;;  %25 = sbr.rel (!%p23_p13) target bundleno = 11 (0xb), region = 122 }
 0x594   : > { %s3308_s14 = smov %s3301_s26 }
 0x599   :  { %1610 = vsyncpa [#allocation3], 1 }
 0x59a   :  { %1612 = vsyncpa [#allocation3 + $0x1], 1 }
 0x59b   :  { %1613 = vsyncpa [#allocation6], 1 }
 0x59c   :  { %1614 = vsyncpa [#allocation9], 1 }
 0x59d   :  { %1615 = vsyncpa [#allocation4], 1 }
 0x59e   :  { %1617 = vsyncpa [#allocation4 + $0x1], 1 }

</bundles_post_ra>
